<compile_context>
chip_gen: v5e
topology: v5e:2x2
jax: 0.10.0
libtpu: 0.0.40
codegen_flags: <defaults>
</compile_context>

<pallas_src>
import functools
import numpy as np
import jax
import jax.numpy as jnp
from jax import lax
from jax.experimental import pallas as pl
from jax.experimental.pallas import tpu as pltpu


def _round_up(n, m):
    return ((n + m - 1) // m) * m


def _softmax_last(x):
    m = jnp.max(x, axis=-1, keepdims=True)
    e = jnp.exp(x - m)
    return e * pl.reciprocal(jnp.sum(e, axis=-1, keepdims=True), approx=True)


def token_generator_kernel(
    outs_ref, gs_ref, mask_ref, copyseq_ref, target_ref,
    wq_ref, bq_ref, wkv_ref, bkv_ref, wo_ref, bo_ref,
    gln_ref, bln_ref, wt_ref, bt_ref, wdg_ref, bdg_ref,
    ll_ref, loss_ref,
    *, padding_idx, d_pad, s_chunk, use_bf16_eup):
    f32, bf16 = jnp.float32, jnp.bfloat16

    bb, tgt_len, E = outs_ref.shape
    src_len = gs_ref.shape[1]
    v_ext = ll_ref.shape[-1]
    rows_t = bb * tgt_len
    rows_s = bb * src_len

    outs = outs_ref[...]                          # [BB, T, E] f32
    pad = mask_ref[...]                           # [BB, 1, S] f32 (1.0 = padded key)
    outs2 = outs.reshape(rows_t, E)               # row-flattened for the MXU
    gs2 = gs_ref[...].reshape(rows_s, E)          # bf16

    # --- single-head attention; scaling pre-folded into wq/bq; K|V fused ---
    q = jnp.dot(outs2.astype(bf16), wq_ref[...], preferred_element_type=f32) + bq_ref[...]
    kv = jnp.dot(gs2, wkv_ref[...], preferred_element_type=f32) + bkv_ref[...]
    k = kv[:, :E]
    v = kv[:, E:]

    q3 = q.reshape(bb, tgt_len, E).astype(bf16)
    k3 = k.reshape(bb, src_len, E).astype(bf16)
    v3 = v.reshape(bb, src_len, E).astype(bf16)

    scores = jnp.einsum('bte,bse->bts', q3, k3, preferred_element_type=f32)
    # finite mask value: a fully-padded key row gives a uniform, NaN-free softmax
    scores = jnp.where(pad > 0.5, -1e30, scores)
    align = _softmax_last(scores)                                    # [BB, T, S] f32

    attn = jnp.einsum('bts,bse->bte', align.astype(bf16), v3,
                      preferred_element_type=f32)                    # [BB, T, E]
    x = jnp.dot(attn.reshape(rows_t, E).astype(bf16), wo_ref[...],
                preferred_element_type=f32) + bo_ref[...]

    # --- residual + LayerNorm (f32) ---
    h = outs2 + x
    mu = jnp.mean(h, axis=-1, keepdims=True)
    var = jnp.mean((h - mu) ** 2, axis=-1, keepdims=True)
    outs_ln = (h - mu) * lax.rsqrt(var + 1e-5) * gln_ref[...] + bln_ref[...]

    # --- transfer + tanh ---
    tok_bf = jnp.tanh(jnp.dot(outs_ln.astype(bf16), wt_ref[...],
                              preferred_element_type=f32) + bt_ref[...]).astype(bf16)

    # --- fused diverter|generator projection (one matmul; gate lanes first) ---
    logits = jnp.dot(tok_bf, wdg_ref[...], preferred_element_type=f32) + bdg_ref[...]
    gates = _softmax_last(logits[:, :d_pad])      # padded cols carry -1e30 bias -> 0
    gen_gate = gates[:, 0:1]                                         # [rows_t, 1]
    copy_gate = gates[:, 1:2]

    gen_logits = logits[:, d_pad:]                                   # [rows_t, v_ext]
    gmax = jnp.max(gen_logits, axis=-1, keepdims=True)
    if use_bf16_eup:                              # bf16 EUP path on v6e / v7x
        ge = jnp.exp((gen_logits - gmax).astype(bf16)).astype(f32)
    else:                                         # v5e: f32 only (no bf16 EUP)
        ge = jnp.exp(gen_logits - gmax)
    gen_probs = gen_gate * ge * pl.reciprocal(
        jnp.sum(ge, axis=-1, keepdims=True), approx=True)

    # --- copy mechanism: scatter_add_ == bf16 one-hot matmul, chunked over src ---
    copy_probs = copy_gate.reshape(bb, tgt_len, 1) * align           # [BB, T, S] f32
    cs = copyseq_ref[...]                                            # [BB, S, 1] int32
    iota_v = lax.broadcasted_iota(jnp.int32, (1, 1, v_ext), 2)
    copy_add = jnp.zeros((bb, tgt_len, v_ext), f32)
    for c in range(src_len // s_chunk):           # static trip count
        s0 = c * s_chunk
        onehot_c = (cs[:, s0:s0 + s_chunk, :] == iota_v).astype(bf16)   # [BB,sc,V]
        cp_c = copy_probs[:, :, s0:s0 + s_chunk].astype(bf16)           # [BB,T,sc]
        copy_add = copy_add + jnp.einsum('bts,bsv->btv', cp_c, onehot_c,
                                         preferred_element_type=f32)

    probs = gen_probs.reshape(bb, tgt_len, v_ext) + copy_add
    if use_bf16_eup:
        ll = jnp.log((probs + 1e-12).astype(bf16)).astype(f32)
    else:
        ll = jnp.log(probs + 1e-12)
    ll_ref[...] = ll

    # --- token loss: -ll at target column, padding masked, summed over time ---
    tg = target_ref[...]                                             # [BB, T, 1] int32
    picked = jnp.sum(jnp.where(tg == iota_v, ll, 0.0), axis=-1, keepdims=True)
    token_loss = jnp.where(tg == padding_idx, 0.0, -picked)          # [BB, T, 1]
    loss_ref[...] = jnp.sum(token_loss, axis=1, keepdims=True)       # [BB, 1, 1]


def _choose_block_batch(bsz, tgt_len, min_rows, avoid_single_step=False):
    """Smallest divisor of bsz giving >= min_rows fused rows per grid step."""
    divisors = [d for d in range(1, bsz + 1) if bsz % d == 0]
    if avoid_single_step and bsz >= 2:
        divisors = [d for d in divisors if bsz // d >= 2]   # keep grid >= 2 (v7x megacore)
    for d in divisors:
        if d * tgt_len >= min_rows:
            return d
    return divisors[-1]


def token_generator_forward(outs, graph_state, key_padding_mask, copy_seq, target,
                            params, padding_idx=0, block_batch=None):
    """Inputs follow the PyTorch module layout:
       outs [tgt, bsz, E], graph_state [src, bsz, E], key_padding_mask [bsz, src] bool,
       copy_seq [src, bsz] int32, target [tgt, bsz] int32.
       Returns (ll [tgt, bsz, v_ext], token_loss [bsz])."""
    tgt_len, bsz, E = outs.shape
    src_len = graph_state.shape[0]
    vocab_size, token_size = params['w_generator'].shape

    # tot_ext = 1 + copy_seq.max().item()  (host-side; static shape for the kernel)
    tot_ext = int(np.asarray(copy_seq).max()) + 1
    v_ext = max(vocab_size, tot_ext)
    v_pad = _round_up(v_ext, 128)                 # lane-dense extended vocab width
    d_pad = 128                                   # lane-dense diverter width
    scaling = float(E) ** -0.5

    # --- chip-dependent knobs ---
    kind = jax.devices()[0].device_kind.lower()
    is_v7 = ('v7' in kind) or ('7x' in kind)
    is_v6 = 'v6' in kind
    is_v5 = 'v5' in kind
    use_bf16_eup = is_v6 or is_v7                 # v5e has no bf16 VPU/EUP path
    if is_v7:
        vmem_limit = 48 * 1024 * 1024             # 64 MiB physical on v7x
    elif is_v6 or is_v5:
        vmem_limit = 100 * 1024 * 1024            # 128 MiB physical on v5e/v6e
    else:
        vmem_limit = 32 * 1024 * 1024             # conservative default
    min_rows = 256 if is_v7 else 512

    tgt_p = _round_up(tgt_len, 8)                 # keep in-kernel reshapes tile-aligned
    src_p = _round_up(src_len, 8)

    bb = block_batch or _choose_block_batch(bsz, tgt_p, min_rows, avoid_single_step=is_v7)
    assert bsz % bb == 0

    if src_p % 32 == 0:
        s_chunk = 32
    elif src_p % 16 == 0:
        s_chunk = 16
    else:
        s_chunk = 8

    f32, bf16, i32 = jnp.float32, jnp.bfloat16, jnp.int32

    # batch-first, 8-row-padded kernel layout; graph_state in bf16 (matmul-only use)
    outs_b = jnp.zeros((bsz, tgt_p, E), f32).at[:, :tgt_len, :].set(
        jnp.transpose(outs, (1, 0, 2)).astype(f32))
    gs_b = jnp.zeros((bsz, src_p, E), bf16).at[:, :src_len, :].set(
        jnp.transpose(graph_state, (1, 0, 2)).astype(bf16))
    mask_b = jnp.ones((bsz, 1, src_p), f32).at[:, :, :src_len].set(
        key_padding_mask.astype(f32).reshape(bsz, 1, src_len))
    cs_b = jnp.zeros((bsz, src_p, 1), i32).at[:, :src_len, :].set(
        jnp.transpose(copy_seq, (1, 0)).astype(i32).reshape(bsz, src_len, 1))
    tg_b = jnp.full((bsz, tgt_p, 1), padding_idx, i32).at[:, :tgt_len, :].set(
        jnp.transpose(target, (1, 0)).astype(i32).reshape(bsz, tgt_len, 1))

    def vec(b):
        return jnp.asarray(b, f32).reshape(1, -1)

    def pad_cols(w, b, ncols, bias_fill):
        cur = w.shape[1]
        if ncols > cur:
            w = jnp.concatenate([w, jnp.zeros((w.shape[0], ncols - cur), w.dtype)], 1)
            b = jnp.concatenate([b, jnp.full((ncols - cur,), bias_fill, b.dtype)], 0)
        return w, b

    # pre-transposed weights (PyTorch Linear: y = x @ W.T + b); MXU operands in bf16
    wq = jnp.asarray(params['w_q'], f32).T * scaling            # scaling folded in
    bq = jnp.asarray(params['b_q'], f32) * scaling
    wkv = jnp.concatenate([jnp.asarray(params['w_k'], f32).T,
                           jnp.asarray(params['w_v'], f32).T], axis=1)      # [E, 2E]
    bkv = jnp.concatenate([jnp.asarray(params['b_k'], f32),
                           jnp.asarray(params['b_v'], f32)], axis=0)
    wo = jnp.asarray(params['w_out'], f32).T
    wt = jnp.asarray(params['w_transfer'], f32).T
    wd, bd = pad_cols(jnp.asarray(params['w_diverter'], f32).T,
                      jnp.asarray(params['b_diverter'], f32), d_pad, -1e30)
    wg, bg = pad_cols(jnp.asarray(params['w_generator'], f32).T,
                      jnp.asarray(params['b_generator'], f32), v_pad, -1e30)
    wdg = jnp.concatenate([wd, wg], axis=1)       # fused diverter|generator matmul
    bdg = jnp.concatenate([bd, bg], axis=0)

    weights = [
        wq.astype(bf16), vec(bq),
        wkv.astype(bf16), vec(bkv),
        wo.astype(bf16), vec(params['b_out']),
        vec(params['ln_g']), vec(params['ln_b']),
        wt.astype(bf16), vec(params['b_transfer']),
        wdg.astype(bf16), vec(bdg),
    ]

    data_specs = [
        pl.BlockSpec((bb, tgt_p, E), lambda b: (b, 0, 0)),
        pl.BlockSpec((bb, src_p, E), lambda b: (b, 0, 0)),
        pl.BlockSpec((bb, 1, src_p), lambda b: (b, 0, 0)),
        pl.BlockSpec((bb, src_p, 1), lambda b: (b, 0, 0)),
        pl.BlockSpec((bb, tgt_p, 1), lambda b: (b, 0, 0)),
    ]

    out_shapes = (
        jax.ShapeDtypeStruct((bsz, tgt_p, v_pad), jnp.float32),
        jax.ShapeDtypeStruct((bsz, 1, 1), jnp.float32),
    )
    out_specs = (
        pl.BlockSpec((bb, tgt_p, v_pad), lambda b: (b, 0, 0)),
        pl.BlockSpec((bb, 1, 1), lambda b: (b, 0, 0)),
    )

    kernel = functools.partial(token_generator_kernel,
                               padding_idx=padding_idx, d_pad=d_pad,
                               s_chunk=s_chunk, use_bf16_eup=use_bf16_eup)

    def build(single_buffer_weights):
        def weight_spec(a):
            nd = a.ndim
            idx = lambda b, _nd=nd: (0,) * _nd
            if single_buffer_weights:
                # grid-invariant weights: one VMEM buffer instead of two
                return pl.BlockSpec(a.shape, idx, pipeline_mode=pl.Buffered(1))
            return pl.BlockSpec(a.shape, idx)
        return pl.pallas_call(
            kernel,
            out_shape=out_shapes,
            grid=(bsz // bb,),
            in_specs=data_specs + [weight_spec(w) for w in weights],
            out_specs=out_specs,
            compiler_params=pltpu.CompilerParams(
                dimension_semantics=("parallel",),
                vmem_limit_bytes=vmem_limit))

    args = (outs_b, gs_b, mask_b, cs_b, tg_b, *weights)
    try:
        ll_b, loss_b = build(True)(*args)
        jax.block_until_ready((ll_b, loss_b))
    except Exception:
        # TODO(synk): pl.Buffered(1) not accepted by this jax/libtpu build;
        # fall back to default double-buffered weight blocks.
        ll_b, loss_b = build(False)(*args)

    ll = jnp.transpose(ll_b[:, :tgt_len, :v_ext], (1, 0, 2))   # back to [tgt, bsz, v_ext]
    token_loss = loss_b.reshape(bsz)
    return ll, token_loss


def reference_forward(outs, graph_state, key_padding_mask, copy_seq, target,
                      params, padding_idx=0):
    """Pure-JAX mirror of the PyTorch forward (eval mode), for validation."""
    tgt_len, bsz, E = outs.shape
    vocab_size = params['w_generator'].shape[0]
    tot_ext = int(np.asarray(copy_seq).max()) + 1
    v_ext = max(vocab_size, tot_ext)
    scaling = float(E) ** -0.5

    o = jnp.transpose(outs, (1, 0, 2))           # [bsz, tgt, E]
    g = jnp.transpose(graph_state, (1, 0, 2))    # [bsz, src, E]
    q = (o @ params['w_q'].T + params['b_q']) * scaling
    k = g @ params['w_k'].T + params['b_k']
    v = g @ params['w_v'].T + params['b_v']
    scores = jnp.einsum('btf,bsf->bts', q, k)
    scores = jnp.where(key_padding_mask[:, None, :], -jnp.inf, scores)
    align = jax.nn.softmax(scores, axis=-1)
    attn = jnp.einsum('bts,bsf->btf', align, v)
    x = attn @ params['w_out'].T + params['b_out']
    h = o + x
    mu = h.mean(-1, keepdims=True)
    var = ((h - mu) ** 2).mean(-1, keepdims=True)
    hn = (h - mu) / jnp.sqrt(var + 1e-5) * params['ln_g'] + params['ln_b']
    tok = jnp.tanh(hn @ params['w_transfer'].T + params['b_transfer'])
    gates = jax.nn.softmax(tok @ params['w_diverter'].T + params['b_diverter'], axis=-1)
    gen_gate, copy_gate = gates[..., 0:1], gates[..., 1:2]
    probs = gen_gate * jax.nn.softmax(tok @ params['w_generator'].T + params['b_generator'], -1)
    if v_ext > vocab_size:
        probs = jnp.concatenate(
            [probs, jnp.zeros((bsz, tgt_len, v_ext - vocab_size), probs.dtype)], -1)
    cs = jnp.transpose(copy_seq, (1, 0))                         # [bsz, src]
    onehot = jax.nn.one_hot(cs, v_ext, dtype=probs.dtype)        # [bsz, src, v_ext]
    copy_probs = copy_gate * align                               # [bsz, tgt, src]
    probs = probs + jnp.einsum('bts,bsv->btv', copy_probs, onehot)
    ll = jnp.log(probs + 1e-12)
    tg = jnp.transpose(target, (1, 0))                           # [bsz, tgt]
    picked = jnp.take_along_axis(ll, tg[..., None], axis=-1)[..., 0]
    loss = jnp.where(tg == padding_idx, 0.0, -picked).sum(axis=1)
    return jnp.transpose(ll, (1, 0, 2)), loss


if __name__ == "__main__":
    key = jax.random.PRNGKey(0)
    tgt_len, src_len, bsz = 8, 8, 2
    embed_dim, token_size, vocab_size = 32, 32, 24
    padding_idx = 0

    ks = jax.random.split(key, 16)
    outs = jax.random.normal(ks[0], (tgt_len, bsz, embed_dim), jnp.float32)
    graph_state = jax.random.normal(ks[1], (src_len, bsz, embed_dim), jnp.float32)
    key_padding_mask = jnp.zeros((bsz, src_len), bool).at[1, -2:].set(True)
    copy_seq = jax.random.randint(ks[2], (src_len, bsz), 0, vocab_size + 4, jnp.int32)
    target = jax.random.randint(ks[3], (tgt_len, bsz), 1, vocab_size, jnp.int32)
    target = target.at[0, 0].set(padding_idx)     # exercise the padding mask

    def nrm(k, shape):
        return 0.02 * jax.random.normal(k, shape, jnp.float32)

    params = dict(
        w_q=nrm(ks[4], (embed_dim, embed_dim)), b_q=jnp.zeros((embed_dim,), jnp.float32),
        w_k=nrm(ks[5], (embed_dim, embed_dim)), b_k=jnp.zeros((embed_dim,), jnp.float32),
        w_v=nrm(ks[6], (embed_dim, embed_dim)), b_v=jnp.zeros((embed_dim,), jnp.float32),
        w_out=nrm(ks[7], (embed_dim, embed_dim)), b_out=jnp.zeros((embed_dim,), jnp.float32),
        ln_g=jnp.ones((embed_dim,), jnp.float32), ln_b=jnp.zeros((embed_dim,), jnp.float32),
        w_transfer=nrm(ks[8], (token_size, embed_dim)),
        b_transfer=jnp.zeros((token_size,), jnp.float32),
        w_diverter=nrm(ks[9], (2, token_size)), b_diverter=jnp.zeros((2,), jnp.float32),
        w_generator=nrm(ks[10], (vocab_size, token_size)),
        b_generator=jnp.zeros((vocab_size,), jnp.float32),
    )

    ll, token_loss = token_generator_forward(
        outs, graph_state, key_padding_mask, copy_seq, target, params, padding_idx)
    jax.block_until_ready(token_loss)

    ll_ref, loss_ref = reference_forward(
        outs, graph_state, key_padding_mask, copy_seq, target, params, padding_idx)

    assert np.allclose(np.asarray(ll), np.asarray(ll_ref), atol=2e-2, rtol=2e-2)
    assert np.allclose(np.asarray(token_loss), np.asarray(loss_ref), atol=2e-2, rtol=2e-2)
    print("KERNEL_OK")
</pallas_src>

<mosaic_0001>
module attributes {stable_mosaic.version = 11 : i64} {
  func.func @token_generator_kernel(%arg0: i32, %arg1: memref<2x8x32xf32, #tpu.memory_space<vmem>>, %arg2: memref<2x8x32xbf16, #tpu.memory_space<vmem>>, %arg3: memref<2x1x8xf32, #tpu.memory_space<vmem>>, %arg4: memref<2x8x1xi32, #tpu.memory_space<vmem>>, %arg5: memref<2x8x1xi32, #tpu.memory_space<vmem>>, %arg6: memref<32x32xbf16, #tpu.memory_space<vmem>>, %arg7: memref<1x32xf32, #tpu.memory_space<vmem>>, %arg8: memref<32x64xbf16, #tpu.memory_space<vmem>>, %arg9: memref<1x64xf32, #tpu.memory_space<vmem>>, %arg10: memref<32x32xbf16, #tpu.memory_space<vmem>>, %arg11: memref<1x32xf32, #tpu.memory_space<vmem>>, %arg12: memref<1x32xf32, #tpu.memory_space<vmem>>, %arg13: memref<1x32xf32, #tpu.memory_space<vmem>>, %arg14: memref<32x32xbf16, #tpu.memory_space<vmem>>, %arg15: memref<1x32xf32, #tpu.memory_space<vmem>>, %arg16: memref<32x256xbf16, #tpu.memory_space<vmem>>, %arg17: memref<1x256xf32, #tpu.memory_space<vmem>>, %arg18: memref<2x8x128xf32, #tpu.memory_space<vmem>>, %arg19: memref<2x1x1xf32, #tpu.memory_space<vmem>>) attributes {dimension_semantics = [#tpu.dimension_semantics<parallel>], iteration_bounds = array<i64: 1>, scalar_prefetch = 0 : i64, scratch_operands = 0 : i64, tpu.core_type = #tpu.core_type<tc>, window_params = [{transform_indices = @transform_0, window_bounds = array<i64: 2, 8, 32>}, {transform_indices = @transform_1, window_bounds = array<i64: 2, 8, 32>}, {transform_indices = @transform_2, window_bounds = array<i64: 2, 1, 8>}, {transform_indices = @transform_3, window_bounds = array<i64: 2, 8, 1>}, {transform_indices = @transform_4, window_bounds = array<i64: 2, 8, 1>}, {pipeline_mode = #tpu.pipeline_mode<synchronous>, transform_indices = @transform_5, window_bounds = array<i64: 32, 32>}, {pipeline_mode = #tpu.pipeline_mode<synchronous>, transform_indices = @transform_6, window_bounds = array<i64: 1, 32>}, {pipeline_mode = #tpu.pipeline_mode<synchronous>, transform_indices = @transform_7, window_bounds = array<i64: 32, 64>}, {pipeline_mode = #tpu.pipeline_mode<synchronous>, transform_indices = @transform_8, window_bounds = array<i64: 1, 64>}, {pipeline_mode = #tpu.pipeline_mode<synchronous>, transform_indices = @transform_9, window_bounds = array<i64: 32, 32>}, {pipeline_mode = #tpu.pipeline_mode<synchronous>, transform_indices = @transform_10, window_bounds = array<i64: 1, 32>}, {pipeline_mode = #tpu.pipeline_mode<synchronous>, transform_indices = @transform_11, window_bounds = array<i64: 1, 32>}, {pipeline_mode = #tpu.pipeline_mode<synchronous>, transform_indices = @transform_12, window_bounds = array<i64: 1, 32>}, {pipeline_mode = #tpu.pipeline_mode<synchronous>, transform_indices = @transform_13, window_bounds = array<i64: 32, 32>}, {pipeline_mode = #tpu.pipeline_mode<synchronous>, transform_indices = @transform_14, window_bounds = array<i64: 1, 32>}, {pipeline_mode = #tpu.pipeline_mode<synchronous>, transform_indices = @transform_15, window_bounds = array<i64: 32, 256>}, {pipeline_mode = #tpu.pipeline_mode<synchronous>, transform_indices = @transform_16, window_bounds = array<i64: 1, 256>}, {transform_indices = @transform_17, window_bounds = array<i64: 2, 8, 128>}, {transform_indices = @transform_18, window_bounds = array<i64: 2, 1, 1>}]} {
    %c0 = arith.constant 0 : index
    %c0_0 = arith.constant 0 : index
    %c0_1 = arith.constant 0 : index
    %0 = vector.load %arg1[%c0, %c0_0, %c0_1] : memref<2x8x32xf32, #tpu.memory_space<vmem>>, vector<2x8x32xf32>
    %c0_2 = arith.constant 0 : index
    %c0_3 = arith.constant 0 : index
    %c0_4 = arith.constant 0 : index
    %1 = vector.load %arg3[%c0_2, %c0_3, %c0_4] : memref<2x1x8xf32, #tpu.memory_space<vmem>>, vector<2x1x8xf32>
    %2 = vector.shape_cast %0 : vector<2x8x32xf32> to vector<16x32xf32>
    %c0_5 = arith.constant 0 : index
    %c0_6 = arith.constant 0 : index
    %c0_7 = arith.constant 0 : index
    %3 = vector.load %arg2[%c0_5, %c0_6, %c0_7] : memref<2x8x32xbf16, #tpu.memory_space<vmem>>, vector<2x8x32xbf16>
    %4 = vector.shape_cast %3 : vector<2x8x32xbf16> to vector<16x32xbf16>
    %5 = arith.truncf %2 : vector<16x32xf32> to vector<16x32xbf16>
    %c0_8 = arith.constant 0 : index
    %c0_9 = arith.constant 0 : index
    %6 = vector.load %arg6[%c0_8, %c0_9] : memref<32x32xbf16, #tpu.memory_space<vmem>>, vector<32x32xbf16>
    %cst = arith.constant dense<0.000000e+00> : vector<16x32xf32>
    %7 = tpu.matmul %5, %6, %cst {dimension_numbers = #tpu.dot_dimension_numbers<[1], [0], [0], [1], [0, 0, 1, 1], [], []>} : vector<16x32xbf16>, vector<32x32xbf16>, vector<16x32xf32> -> vector<16x32xf32>
    %c0_10 = arith.constant 0 : index
    %c0_11 = arith.constant 0 : index
    %8 = vector.load %arg7[%c0_10, %c0_11] : memref<1x32xf32, #tpu.memory_space<vmem>>, vector<1x32xf32>
    %9 = vector.broadcast %8 : vector<1x32xf32> to vector<16x32xf32>
    %10 = arith.addf %7, %9 : vector<16x32xf32>
    %c0_12 = arith.constant 0 : index
    %c0_13 = arith.constant 0 : index
    %11 = vector.load %arg8[%c0_12, %c0_13] : memref<32x64xbf16, #tpu.memory_space<vmem>>, vector<32x64xbf16>
    %cst_14 = arith.constant dense<0.000000e+00> : vector<16x64xf32>
    %12 = tpu.matmul %4, %11, %cst_14 {dimension_numbers = #tpu.dot_dimension_numbers<[1], [0], [0], [1], [0, 0, 1, 1], [], []>} : vector<16x32xbf16>, vector<32x64xbf16>, vector<16x64xf32> -> vector<16x64xf32>
    %c0_15 = arith.constant 0 : index
    %c0_16 = arith.constant 0 : index
    %13 = vector.load %arg9[%c0_15, %c0_16] : memref<1x64xf32, #tpu.memory_space<vmem>>, vector<1x64xf32>
    %14 = vector.broadcast %13 : vector<1x64xf32> to vector<16x64xf32>
    %15 = arith.addf %12, %14 : vector<16x64xf32>
    %16 = vector.extract_strided_slice %15 {offsets = [0, 0], sizes = [16, 32], strides = [1, 1]} : vector<16x64xf32> to vector<16x32xf32>
    %17 = vector.extract_strided_slice %15 {offsets = [0, 32], sizes = [16, 32], strides = [1, 1]} : vector<16x64xf32> to vector<16x32xf32>
    %18 = vector.shape_cast %10 : vector<16x32xf32> to vector<2x8x32xf32>
    %19 = arith.truncf %18 : vector<2x8x32xf32> to vector<2x8x32xbf16>
    %20 = vector.shape_cast %16 : vector<16x32xf32> to vector<2x8x32xf32>
    %21 = arith.truncf %20 : vector<2x8x32xf32> to vector<2x8x32xbf16>
    %22 = vector.shape_cast %17 : vector<16x32xf32> to vector<2x8x32xf32>
    %23 = arith.truncf %22 : vector<2x8x32xf32> to vector<2x8x32xbf16>
    "tpu.trace_start"() <{level = 10 : i32, message = "bte,bse->bts"}> : () -> ()
    %cst_17 = arith.constant dense<0.000000e+00> : vector<2x8x8xf32>
    %24 = tpu.matmul %19, %21, %cst_17 {dimension_numbers = #tpu.dot_dimension_numbers<[2], [2], [1], [1], [0, 0, 0, 1, 1, 1], [0], [0]>} : vector<2x8x32xbf16>, vector<2x8x32xbf16>, vector<2x8x8xf32> -> vector<2x8x8xf32>
    %cst_18 = arith.constant 5.000000e-01 : f32
    "tpu.trace_stop"() : () -> ()
    %25 = vector.broadcast %cst_18 : f32 to vector<2x1x8xf32>
    %26 = arith.cmpf ogt, %1, %25 : vector<2x1x8xf32>
    %cst_19 = arith.constant -1.000000e+30 : f32
    %27 = vector.shape_cast %26 : vector<2x1x8xi1> to vector<2x1x8xi1>
    %28 = vector.broadcast %27 : vector<2x1x8xi1> to vector<2x8x8xi1>
    %29 = vector.broadcast %cst_19 : f32 to vector<2x8x8xf32>
    %30 = arith.select %28, %29, %24 : vector<2x8x8xi1>, vector<2x8x8xf32>
    %cst_20 = arith.constant dense<0xFF800000> : vector<2x8xf32>
    %31 = vector.multi_reduction <maximumf>, %30, %cst_20 [2] : vector<2x8x8xf32> to vector<2x8xf32>
    %32 = vector.shape_cast %31 : vector<2x8xf32> to vector<2x8x1xf32>
    %33 = vector.broadcast %32 : vector<2x8x1xf32> to vector<2x8x8xf32>
    %34 = arith.subf %30, %33 : vector<2x8x8xf32>
    %35 = math.exp %34 : vector<2x8x8xf32>
    %cst_21 = arith.constant dense<0.000000e+00> : vector<2x8xf32>
    %36 = vector.multi_reduction <add>, %35, %cst_21 [2] : vector<2x8x8xf32> to vector<2x8xf32>
    %37 = vector.shape_cast %36 : vector<2x8xf32> to vector<2x8x1xf32>
    %38 = tpu.reciprocal %37 {approx = true} : vector<2x8x1xf32> -> vector<2x8x1xf32>
    %39 = vector.broadcast %38 : vector<2x8x1xf32> to vector<2x8x8xf32>
    %40 = arith.mulf %35, %39 : vector<2x8x8xf32>
    %41 = arith.truncf %40 : vector<2x8x8xf32> to vector<2x8x8xbf16>
    "tpu.trace_start"() <{level = 10 : i32, message = "bts,bse->bte"}> : () -> ()
    %cst_22 = arith.constant dense<0.000000e+00> : vector<2x8x32xf32>
    %42 = tpu.matmul %41, %23, %cst_22 {dimension_numbers = #tpu.dot_dimension_numbers<[2], [1], [1], [2], [0, 0, 0, 1, 1, 2], [0], [0]>} : vector<2x8x8xbf16>, vector<2x8x32xbf16>, vector<2x8x32xf32> -> vector<2x8x32xf32>
    "tpu.trace_stop"() : () -> ()
    %43 = vector.shape_cast %42 : vector<2x8x32xf32> to vector<16x32xf32>
    %44 = arith.truncf %43 : vector<16x32xf32> to vector<16x32xbf16>
    %c0_23 = arith.constant 0 : index
    %c0_24 = arith.constant 0 : index
    %45 = vector.load %arg10[%c0_23, %c0_24] : memref<32x32xbf16, #tpu.memory_space<vmem>>, vector<32x32xbf16>
    %cst_25 = arith.constant dense<0.000000e+00> : vector<16x32xf32>
    %46 = tpu.matmul %44, %45, %cst_25 {dimension_numbers = #tpu.dot_dimension_numbers<[1], [0], [0], [1], [0, 0, 1, 1], [], []>} : vector<16x32xbf16>, vector<32x32xbf16>, vector<16x32xf32> -> vector<16x32xf32>
    %c0_26 = arith.constant 0 : index
    %c0_27 = arith.constant 0 : index
    %47 = vector.load %arg11[%c0_26, %c0_27] : memref<1x32xf32, #tpu.memory_space<vmem>>, vector<1x32xf32>
    %48 = vector.broadcast %47 : vector<1x32xf32> to vector<16x32xf32>
    %49 = arith.addf %46, %48 : vector<16x32xf32>
    %50 = arith.addf %2, %49 : vector<16x32xf32>
    %cst_28 = arith.constant dense<0.000000e+00> : vector<16xf32>
    %51 = vector.multi_reduction <add>, %50, %cst_28 [1] : vector<16x32xf32> to vector<16xf32>
    %52 = vector.shape_cast %51 : vector<16xf32> to vector<16x1xf32>
    %cst_29 = arith.constant 3.200000e+01 : f32
    %53 = vector.broadcast %cst_29 : f32 to vector<16x1xf32>
    %54 = arith.divf %52, %53 : vector<16x1xf32>
    %55 = vector.broadcast %54 : vector<16x1xf32> to vector<16x32xf32>
    %56 = arith.subf %50, %55 : vector<16x32xf32>
    %57 = arith.mulf %56, %56 : vector<16x32xf32>
    %cst_30 = arith.constant dense<0.000000e+00> : vector<16xf32>
    %58 = vector.multi_reduction <add>, %57, %cst_30 [1] : vector<16x32xf32> to vector<16xf32>
    %59 = vector.shape_cast %58 : vector<16xf32> to vector<16x1xf32>
    %cst_31 = arith.constant 3.200000e+01 : f32
    %60 = vector.broadcast %cst_31 : f32 to vector<16x1xf32>
    %61 = arith.divf %59, %60 : vector<16x1xf32>
    %62 = vector.broadcast %54 : vector<16x1xf32> to vector<16x32xf32>
    %63 = arith.subf %50, %62 : vector<16x32xf32>
    %cst_32 = arith.constant 9.99999974E-6 : f32
    %64 = vector.broadcast %cst_32 : f32 to vector<16x1xf32>
    %65 = arith.addf %61, %64 : vector<16x1xf32>
    %66 = math.rsqrt %65 : vector<16x1xf32>
    %67 = vector.broadcast %66 : vector<16x1xf32> to vector<16x32xf32>
    %68 = arith.mulf %63, %67 : vector<16x32xf32>
    %c0_33 = arith.constant 0 : index
    %c0_34 = arith.constant 0 : index
    %69 = vector.load %arg12[%c0_33, %c0_34] : memref<1x32xf32, #tpu.memory_space<vmem>>, vector<1x32xf32>
    %70 = vector.broadcast %69 : vector<1x32xf32> to vector<16x32xf32>
    %71 = arith.mulf %68, %70 : vector<16x32xf32>
    %c0_35 = arith.constant 0 : index
    %c0_36 = arith.constant 0 : index
    %72 = vector.load %arg13[%c0_35, %c0_36] : memref<1x32xf32, #tpu.memory_space<vmem>>, vector<1x32xf32>
    %73 = vector.broadcast %72 : vector<1x32xf32> to vector<16x32xf32>
    %74 = arith.addf %71, %73 : vector<16x32xf32>
    %75 = arith.truncf %74 : vector<16x32xf32> to vector<16x32xbf16>
    %c0_37 = arith.constant 0 : index
    %c0_38 = arith.constant 0 : index
    %76 = vector.load %arg14[%c0_37, %c0_38] : memref<32x32xbf16, #tpu.memory_space<vmem>>, vector<32x32xbf16>
    %cst_39 = arith.constant dense<0.000000e+00> : vector<16x32xf32>
    %77 = tpu.matmul %75, %76, %cst_39 {dimension_numbers = #tpu.dot_dimension_numbers<[1], [0], [0], [1], [0, 0, 1, 1], [], []>} : vector<16x32xbf16>, vector<32x32xbf16>, vector<16x32xf32> -> vector<16x32xf32>
    %c0_40 = arith.constant 0 : index
    %c0_41 = arith.constant 0 : index
    %78 = vector.load %arg15[%c0_40, %c0_41] : memref<1x32xf32, #tpu.memory_space<vmem>>, vector<1x32xf32>
    %79 = vector.broadcast %78 : vector<1x32xf32> to vector<16x32xf32>
    %80 = arith.addf %77, %79 : vector<16x32xf32>
    %81 = math.tanh %80 : vector<16x32xf32>
    %82 = arith.truncf %81 : vector<16x32xf32> to vector<16x32xbf16>
    %c0_42 = arith.constant 0 : index
    %c0_43 = arith.constant 0 : index
    %83 = vector.load %arg16[%c0_42, %c0_43] : memref<32x256xbf16, #tpu.memory_space<vmem>>, vector<32x256xbf16>
    %cst_44 = arith.constant dense<0.000000e+00> : vector<16x256xf32>
    %84 = tpu.matmul %82, %83, %cst_44 {dimension_numbers = #tpu.dot_dimension_numbers<[1], [0], [0], [1], [0, 0, 1, 1], [], []>} : vector<16x32xbf16>, vector<32x256xbf16>, vector<16x256xf32> -> vector<16x256xf32>
    %c0_45 = arith.constant 0 : index
    %c0_46 = arith.constant 0 : index
    %85 = vector.load %arg17[%c0_45, %c0_46] : memref<1x256xf32, #tpu.memory_space<vmem>>, vector<1x256xf32>
    %86 = vector.broadcast %85 : vector<1x256xf32> to vector<16x256xf32>
    %87 = arith.addf %84, %86 : vector<16x256xf32>
    %88 = vector.extract_strided_slice %87 {offsets = [0, 0], sizes = [16, 128], strides = [1, 1]} : vector<16x256xf32> to vector<16x128xf32>
    %cst_47 = arith.constant dense<0xFF800000> : vector<16xf32>
    %89 = vector.multi_reduction <maximumf>, %88, %cst_47 [1] : vector<16x128xf32> to vector<16xf32>
    %90 = vector.shape_cast %89 : vector<16xf32> to vector<16x1xf32>
    %91 = vector.broadcast %90 : vector<16x1xf32> to vector<16x128xf32>
    %92 = arith.subf %88, %91 : vector<16x128xf32>
    %93 = math.exp %92 : vector<16x128xf32>
    %cst_48 = arith.constant dense<0.000000e+00> : vector<16xf32>
    %94 = vector.multi_reduction <add>, %93, %cst_48 [1] : vector<16x128xf32> to vector<16xf32>
    %95 = vector.shape_cast %94 : vector<16xf32> to vector<16x1xf32>
    %96 = tpu.reciprocal %95 {approx = true} : vector<16x1xf32> -> vector<16x1xf32>
    %97 = vector.broadcast %96 : vector<16x1xf32> to vector<16x128xf32>
    %98 = arith.mulf %93, %97 : vector<16x128xf32>
    %99 = vector.extract_strided_slice %98 {offsets = [0, 0], sizes = [16, 1], strides = [1, 1]} : vector<16x128xf32> to vector<16x1xf32>
    %100 = vector.extract_strided_slice %98 {offsets = [0, 1], sizes = [16, 1], strides = [1, 1]} : vector<16x128xf32> to vector<16x1xf32>
    %101 = vector.extract_strided_slice %87 {offsets = [0, 128], sizes = [16, 128], strides = [1, 1]} : vector<16x256xf32> to vector<16x128xf32>
    %cst_49 = arith.constant dense<0xFF800000> : vector<16xf32>
    %102 = vector.multi_reduction <maximumf>, %101, %cst_49 [1] : vector<16x128xf32> to vector<16xf32>
    %103 = vector.shape_cast %102 : vector<16xf32> to vector<16x1xf32>
    %104 = vector.broadcast %103 : vector<16x1xf32> to vector<16x128xf32>
    %105 = arith.subf %101, %104 : vector<16x128xf32>
    %106 = math.exp %105 : vector<16x128xf32>
    %107 = vector.broadcast %99 : vector<16x1xf32> to vector<16x128xf32>
    %108 = arith.mulf %107, %106 : vector<16x128xf32>
    %cst_50 = arith.constant dense<0.000000e+00> : vector<16xf32>
    %109 = vector.multi_reduction <add>, %106, %cst_50 [1] : vector<16x128xf32> to vector<16xf32>
    %110 = vector.shape_cast %109 : vector<16xf32> to vector<16x1xf32>
    %111 = tpu.reciprocal %110 {approx = true} : vector<16x1xf32> -> vector<16x1xf32>
    %112 = vector.broadcast %111 : vector<16x1xf32> to vector<16x128xf32>
    %113 = arith.mulf %108, %112 : vector<16x128xf32>
    %114 = vector.shape_cast %100 : vector<16x1xf32> to vector<2x8x1xf32>
    %115 = vector.broadcast %114 : vector<2x8x1xf32> to vector<2x8x8xf32>
    %116 = arith.mulf %115, %40 : vector<2x8x8xf32>
    %c0_51 = arith.constant 0 : index
    %c0_52 = arith.constant 0 : index
    %c0_53 = arith.constant 0 : index
    %117 = vector.load %arg4[%c0_51, %c0_52, %c0_53] : memref<2x8x1xi32, #tpu.memory_space<vmem>>, vector<2x8x1xi32>
    %118 = tpu.iota {dimensions = array<i32: 2>} : vector<1x1x128xi32>
    %cst_54 = arith.constant 0.000000e+00 : f32
    %119 = vector.broadcast %cst_54 : f32 to vector<2x8x128xf32>
    %120 = vector.broadcast %117 : vector<2x8x1xi32> to vector<2x8x128xi32>
    %121 = vector.broadcast %118 : vector<1x1x128xi32> to vector<2x8x128xi32>
    %122 = arith.cmpi eq, %120, %121 : vector<2x8x128xi32>
    %123 = arith.extui %122 : vector<2x8x128xi1> to vector<2x8x128xi32>
    %124 = arith.sitofp %123 : vector<2x8x128xi32> to vector<2x8x128xf32>
    %125 = arith.truncf %124 : vector<2x8x128xf32> to vector<2x8x128xbf16>
    %126 = arith.truncf %116 : vector<2x8x8xf32> to vector<2x8x8xbf16>
    "tpu.trace_start"() <{level = 10 : i32, message = "bts,bsv->btv"}> : () -> ()
    %cst_55 = arith.constant dense<0.000000e+00> : vector<2x8x128xf32>
    %127 = tpu.matmul %126, %125, %cst_55 {dimension_numbers = #tpu.dot_dimension_numbers<[2], [1], [1], [2], [0, 0, 0, 1, 1, 2], [0], [0]>} : vector<2x8x8xbf16>, vector<2x8x128xbf16>, vector<2x8x128xf32> -> vector<2x8x128xf32>
    "tpu.trace_stop"() : () -> ()
    %128 = arith.addf %119, %127 : vector<2x8x128xf32>
    %129 = vector.shape_cast %113 : vector<16x128xf32> to vector<2x8x128xf32>
    %130 = arith.addf %129, %128 : vector<2x8x128xf32>
    %cst_56 = arith.constant 9.99999996E-13 : f32
    %131 = vector.broadcast %cst_56 : f32 to vector<2x8x128xf32>
    %132 = arith.addf %130, %131 : vector<2x8x128xf32>
    %133 = math.log %132 : vector<2x8x128xf32>
    %c0_57 = arith.constant 0 : index
    %c0_58 = arith.constant 0 : index
    %c0_59 = arith.constant 0 : index
    %134 = vector.load %arg18[%c0_57, %c0_58, %c0_59] : memref<2x8x128xf32, #tpu.memory_space<vmem>>, vector<2x8x128xf32>
    tpu.vector_store %arg18[%c0_57, %c0_58, %c0_59], %133 {strides = array<i32>} : memref<2x8x128xf32, #tpu.memory_space<vmem>>, vector<2x8x128xf32>,
    %c0_60 = arith.constant 0 : index
    %c0_61 = arith.constant 0 : index
    %c0_62 = arith.constant 0 : index
    %135 = vector.load %arg5[%c0_60, %c0_61, %c0_62] : memref<2x8x1xi32, #tpu.memory_space<vmem>>, vector<2x8x1xi32>
    %136 = vector.broadcast %135 : vector<2x8x1xi32> to vector<2x8x128xi32>
    %137 = vector.broadcast %118 : vector<1x1x128xi32> to vector<2x8x128xi32>
    %138 = arith.cmpi eq, %136, %137 : vector<2x8x128xi32>
    %cst_63 = arith.constant 0.000000e+00 : f32
    %139 = vector.broadcast %cst_63 : f32 to vector<2x8x128xf32>
    %140 = arith.select %138, %133, %139 : vector<2x8x128xi1>, vector<2x8x128xf32>
    %cst_64 = arith.constant dense<0.000000e+00> : vector<2x8xf32>
    %141 = vector.multi_reduction <add>, %140, %cst_64 [2] : vector<2x8x128xf32> to vector<2x8xf32>
    %142 = vector.shape_cast %141 : vector<2x8xf32> to vector<2x8x1xf32>
    %c0_i32 = arith.constant 0 : i32
    %143 = vector.broadcast %c0_i32 : i32 to vector<2x8x1xi32>
    %144 = arith.cmpi eq, %135, %143 : vector<2x8x1xi32>
    %cst_65 = arith.constant 0.000000e+00 : f32
    %145 = vector.broadcast %cst_65 : f32 to vector<2x8x1xf32>
    %146 = arith.subf %145, %142 : vector<2x8x1xf32>
    %cst_66 = arith.constant 0.000000e+00 : f32
    %147 = vector.broadcast %cst_66 : f32 to vector<2x8x1xf32>
    %148 = arith.select %144, %147, %146 : vector<2x8x1xi1>, vector<2x8x1xf32>
    %cst_67 = arith.constant dense<0.000000e+00> : vector<2x1xf32>
    %149 = vector.multi_reduction <add>, %148, %cst_67 [1] : vector<2x8x1xf32> to vector<2x1xf32>
    %150 = vector.shape_cast %149 : vector<2x1xf32> to vector<2x1x1xf32>
    %c0_68 = arith.constant 0 : index
    %c0_69 = arith.constant 0 : index
    %c0_70 = arith.constant 0 : index
    %151 = vector.load %arg19[%c0_68, %c0_69, %c0_70] : memref<2x1x1xf32, #tpu.memory_space<vmem>>, vector<2x1x1xf32>
    tpu.vector_store %arg19[%c0_68, %c0_69, %c0_70], %150 {strides = array<i32>} : memref<2x1x1xf32, #tpu.memory_space<vmem>>, vector<2x1x1xf32>,
    return
  }
  func.func @transform_0(%arg0: i32) -> (i32, i32, i32) {
    %c0_i32 = arith.constant 0 : i32
    %c0_i32_0 = arith.constant 0 : i32
    %c0_i32_1 = arith.constant 0 : i32
    return %arg0, %c0_i32, %c0_i32_0 : i32, i32, i32
  }
  func.func @transform_1(%arg0: i32) -> (i32, i32, i32) {
    %c0_i32 = arith.constant 0 : i32
    %c0_i32_0 = arith.constant 0 : i32
    %c0_i32_1 = arith.constant 0 : i32
    return %arg0, %c0_i32, %c0_i32_0 : i32, i32, i32
  }
  func.func @transform_2(%arg0: i32) -> (i32, i32, i32) {
    %c0_i32 = arith.constant 0 : i32
    %c0_i32_0 = arith.constant 0 : i32
    %c0_i32_1 = arith.constant 0 : i32
    return %arg0, %c0_i32, %c0_i32_0 : i32, i32, i32
  }
  func.func @transform_3(%arg0: i32) -> (i32, i32, i32) {
    %c0_i32 = arith.constant 0 : i32
    %c0_i32_0 = arith.constant 0 : i32
    %c0_i32_1 = arith.constant 0 : i32
    return %arg0, %c0_i32, %c0_i32_0 : i32, i32, i32
  }
  func.func @transform_4(%arg0: i32) -> (i32, i32, i32) {
    %c0_i32 = arith.constant 0 : i32
    %c0_i32_0 = arith.constant 0 : i32
    %c0_i32_1 = arith.constant 0 : i32
    return %arg0, %c0_i32, %c0_i32_0 : i32, i32, i32
  }
  func.func @transform_5(%arg0: i32) -> (i32, i32) {
    %c0_i32 = arith.constant 0 : i32
    %c0_i32_0 = arith.constant 0 : i32
    %c0_i32_1 = arith.constant 0 : i32
    return %c0_i32, %c0_i32_0 : i32, i32
  }
  func.func @transform_6(%arg0: i32) -> (i32, i32) {
    %c0_i32 = arith.constant 0 : i32
    %c0_i32_0 = arith.constant 0 : i32
    %c0_i32_1 = arith.constant 0 : i32
    return %c0_i32, %c0_i32_0 : i32, i32
  }
  func.func @transform_7(%arg0: i32) -> (i32, i32) {
    %c0_i32 = arith.constant 0 : i32
    %c0_i32_0 = arith.constant 0 : i32
    %c0_i32_1 = arith.constant 0 : i32
    return %c0_i32, %c0_i32_0 : i32, i32
  }
  func.func @transform_8(%arg0: i32) -> (i32, i32) {
    %c0_i32 = arith.constant 0 : i32
    %c0_i32_0 = arith.constant 0 : i32
    %c0_i32_1 = arith.constant 0 : i32
    return %c0_i32, %c0_i32_0 : i32, i32
  }
  func.func @transform_9(%arg0: i32) -> (i32, i32) {
    %c0_i32 = arith.constant 0 : i32
    %c0_i32_0 = arith.constant 0 : i32
    %c0_i32_1 = arith.constant 0 : i32
    return %c0_i32, %c0_i32_0 : i32, i32
  }
  func.func @transform_10(%arg0: i32) -> (i32, i32) {
    %c0_i32 = arith.constant 0 : i32
    %c0_i32_0 = arith.constant 0 : i32
    %c0_i32_1 = arith.constant 0 : i32
    return %c0_i32, %c0_i32_0 : i32, i32
  }
  func.func @transform_11(%arg0: i32) -> (i32, i32) {
    %c0_i32 = arith.constant 0 : i32
    %c0_i32_0 = arith.constant 0 : i32
    %c0_i32_1 = arith.constant 0 : i32
    return %c0_i32, %c0_i32_0 : i32, i32
  }
  func.func @transform_12(%arg0: i32) -> (i32, i32) {
    %c0_i32 = arith.constant 0 : i32
    %c0_i32_0 = arith.constant 0 : i32
    %c0_i32_1 = arith.constant 0 : i32
    return %c0_i32, %c0_i32_0 : i32, i32
  }
  func.func @transform_13(%arg0: i32) -> (i32, i32) {
    %c0_i32 = arith.constant 0 : i32
    %c0_i32_0 = arith.constant 0 : i32
    %c0_i32_1 = arith.constant 0 : i32
    return %c0_i32, %c0_i32_0 : i32, i32
  }
  func.func @transform_14(%arg0: i32) -> (i32, i32) {
    %c0_i32 = arith.constant 0 : i32
    %c0_i32_0 = arith.constant 0 : i32
    %c0_i32_1 = arith.constant 0 : i32
    return %c0_i32, %c0_i32_0 : i32, i32
  }
  func.func @transform_15(%arg0: i32) -> (i32, i32) {
    %c0_i32 = arith.constant 0 : i32
    %c0_i32_0 = arith.constant 0 : i32
    %c0_i32_1 = arith.constant 0 : i32
    return %c0_i32, %c0_i32_0 : i32, i32
  }
  func.func @transform_16(%arg0: i32) -> (i32, i32) {
    %c0_i32 = arith.constant 0 : i32
    %c0_i32_0 = arith.constant 0 : i32
    %c0_i32_1 = arith.constant 0 : i32
    return %c0_i32, %c0_i32_0 : i32, i32
  }
  func.func @transform_17(%arg0: i32) -> (i32, i32, i32) {
    %c0_i32 = arith.constant 0 : i32
    %c0_i32_0 = arith.constant 0 : i32
    %c0_i32_1 = arith.constant 0 : i32
    return %arg0, %c0_i32, %c0_i32_0 : i32, i32, i32
  }
  func.func @transform_18(%arg0: i32) -> (i32, i32, i32) {
    %c0_i32 = arith.constant 0 : i32
    %c0_i32_0 = arith.constant 0 : i32
    %c0_i32_1 = arith.constant 0 : i32
    return %arg0, %c0_i32, %c0_i32_0 : i32, i32, i32
  }
}

module attributes {stable_mosaic.version = 11 : i64} {
  func.func @token_generator_kernel(%arg0: i32, %arg1: memref<2x8x32xf32, #tpu.memory_space<vmem>>, %arg2: memref<2x8x32xbf16, #tpu.memory_space<vmem>>, %arg3: memref<2x1x8xf32, #tpu.memory_space<vmem>>, %arg4: memref<2x8x1xi32, #tpu.memory_space<vmem>>, %arg5: memref<2x8x1xi32, #tpu.memory_space<vmem>>, %arg6: memref<32x32xbf16, #tpu.memory_space<vmem>>, %arg7: memref<1x32xf32, #tpu.memory_space<vmem>>, %arg8: memref<32x64xbf16, #tpu.memory_space<vmem>>, %arg9: memref<1x64xf32, #tpu.memory_space<vmem>>, %arg10: memref<32x32xbf16, #tpu.memory_space<vmem>>, %arg11: memref<1x32xf32, #tpu.memory_space<vmem>>, %arg12: memref<1x32xf32, #tpu.memory_space<vmem>>, %arg13: memref<1x32xf32, #tpu.memory_space<vmem>>, %arg14: memref<32x32xbf16, #tpu.memory_space<vmem>>, %arg15: memref<1x32xf32, #tpu.memory_space<vmem>>, %arg16: memref<32x256xbf16, #tpu.memory_space<vmem>>, %arg17: memref<1x256xf32, #tpu.memory_space<vmem>>, %arg18: memref<2x8x128xf32, #tpu.memory_space<vmem>>, %arg19: memref<2x1x1xf32, #tpu.memory_space<vmem>>) attributes {dimension_semantics = [#tpu.dimension_semantics<parallel>], iteration_bounds = array<i64: 1>, scalar_prefetch = 0 : i64, scratch_operands = 0 : i64, tpu.core_type = #tpu.core_type<tc>, window_params = [{transform_indices = @transform_0, window_bounds = array<i64: 2, 8, 32>}, {transform_indices = @transform_1, window_bounds = array<i64: 2, 8, 32>}, {transform_indices = @transform_2, window_bounds = array<i64: 2, 1, 8>}, {transform_indices = @transform_3, window_bounds = array<i64: 2, 8, 1>}, {transform_indices = @transform_4, window_bounds = array<i64: 2, 8, 1>}, {pipeline_mode = #tpu.pipeline_mode<synchronous>, transform_indices = @transform_5, window_bounds = array<i64: 32, 32>}, {pipeline_mode = #tpu.pipeline_mode<synchronous>, transform_indices = @transform_6, window_bounds = array<i64: 1, 32>}, {pipeline_mode = #tpu.pipeline_mode<synchronous>, transform_indices = @transform_7, window_bounds = array<i64: 32, 64>}, {pipeline_mode = #tpu.pipeline_mode<synchronous>, transform_indices = @transform_8, window_bounds = array<i64: 1, 64>}, {pipeline_mode = #tpu.pipeline_mode<synchronous>, transform_indices = @transform_9, window_bounds = array<i64: 32, 32>}, {pipeline_mode = #tpu.pipeline_mode<synchronous>, transform_indices = @transform_10, window_bounds = array<i64: 1, 32>}, {pipeline_mode = #tpu.pipeline_mode<synchronous>, transform_indices = @transform_11, window_bounds = array<i64: 1, 32>}, {pipeline_mode = #tpu.pipeline_mode<synchronous>, transform_indices = @transform_12, window_bounds = array<i64: 1, 32>}, {pipeline_mode = #tpu.pipeline_mode<synchronous>, transform_indices = @transform_13, window_bounds = array<i64: 32, 32>}, {pipeline_mode = #tpu.pipeline_mode<synchronous>, transform_indices = @transform_14, window_bounds = array<i64: 1, 32>}, {pipeline_mode = #tpu.pipeline_mode<synchronous>, transform_indices = @transform_15, window_bounds = array<i64: 32, 256>}, {pipeline_mode = #tpu.pipeline_mode<synchronous>, transform_indices = @transform_16, window_bounds = array<i64: 1, 256>}, {transform_indices = @transform_17, window_bounds = array<i64: 2, 8, 128>}, {transform_indices = @transform_18, window_bounds = array<i64: 2, 1, 1>}]} {
    %c0 = arith.constant 0 : index
    %c0_0 = arith.constant 0 : index
    %c0_1 = arith.constant 0 : index
    %0 = vector.load %arg1[%c0, %c0_0, %c0_1] : memref<2x8x32xf32, #tpu.memory_space<vmem>>, vector<2x8x32xf32>
    %c0_2 = arith.constant 0 : index
    %c0_3 = arith.constant 0 : index
    %c0_4 = arith.constant 0 : index
    %1 = vector.load %arg3[%c0_2, %c0_3, %c0_4] : memref<2x1x8xf32, #tpu.memory_space<vmem>>, vector<2x1x8xf32>
    %2 = vector.shape_cast %0 : vector<2x8x32xf32> to vector<16x32xf32>
    %c0_5 = arith.constant 0 : index
    %c0_6 = arith.constant 0 : index
    %c0_7 = arith.constant 0 : index
    %3 = vector.load %arg2[%c0_5, %c0_6, %c0_7] : memref<2x8x32xbf16, #tpu.memory_space<vmem>>, vector<2x8x32xbf16>
    %4 = vector.shape_cast %3 : vector<2x8x32xbf16> to vector<16x32xbf16>
    %5 = arith.truncf %2 : vector<16x32xf32> to vector<16x32xbf16>
    %c0_8 = arith.constant 0 : index
    %c0_9 = arith.constant 0 : index
    %6 = vector.load %arg6[%c0_8, %c0_9] : memref<32x32xbf16, #tpu.memory_space<vmem>>, vector<32x32xbf16>
    %cst = arith.constant dense<0.000000e+00> : vector<16x32xf32>
    %7 = tpu.matmul %5, %6, %cst {dimension_numbers = #tpu.dot_dimension_numbers<[1], [0], [0], [1], [0, 0, 1, 1], [], []>} : vector<16x32xbf16>, vector<32x32xbf16>, vector<16x32xf32> -> vector<16x32xf32>
    %c0_10 = arith.constant 0 : index
    %c0_11 = arith.constant 0 : index
    %8 = vector.load %arg7[%c0_10, %c0_11] : memref<1x32xf32, #tpu.memory_space<vmem>>, vector<1x32xf32>
    %9 = vector.broadcast %8 : vector<1x32xf32> to vector<16x32xf32>
    %10 = arith.addf %7, %9 : vector<16x32xf32>
    %c0_12 = arith.constant 0 : index
    %c0_13 = arith.constant 0 : index
    %11 = vector.load %arg8[%c0_12, %c0_13] : memref<32x64xbf16, #tpu.memory_space<vmem>>, vector<32x64xbf16>
    %cst_14 = arith.constant dense<0.000000e+00> : vector<16x64xf32>
    %12 = tpu.matmul %4, %11, %cst_14 {dimension_numbers = #tpu.dot_dimension_numbers<[1], [0], [0], [1], [0, 0, 1, 1], [], []>} : vector<16x32xbf16>, vector<32x64xbf16>, vector<16x64xf32> -> vector<16x64xf32>
    %c0_15 = arith.constant 0 : index
    %c0_16 = arith.constant 0 : index
    %13 = vector.load %arg9[%c0_15, %c0_16] : memref<1x64xf32, #tpu.memory_space<vmem>>, vector<1x64xf32>
    %14 = vector.broadcast %13 : vector<1x64xf32> to vector<16x64xf32>
    %15 = arith.addf %12, %14 : vector<16x64xf32>
    %16 = vector.extract_strided_slice %15 {offsets = [0, 0], sizes = [16, 32], strides = [1, 1]} : vector<16x64xf32> to vector<16x32xf32>
    %17 = vector.extract_strided_slice %15 {offsets = [0, 32], sizes = [16, 32], strides = [1, 1]} : vector<16x64xf32> to vector<16x32xf32>
    %18 = vector.shape_cast %10 : vector<16x32xf32> to vector<2x8x32xf32>
    %19 = arith.truncf %18 : vector<2x8x32xf32> to vector<2x8x32xbf16>
    %20 = vector.shape_cast %16 : vector<16x32xf32> to vector<2x8x32xf32>
    %21 = arith.truncf %20 : vector<2x8x32xf32> to vector<2x8x32xbf16>
    %22 = vector.shape_cast %17 : vector<16x32xf32> to vector<2x8x32xf32>
    %23 = arith.truncf %22 : vector<2x8x32xf32> to vector<2x8x32xbf16>
    "tpu.trace_start"() <{level = 10 : i32, message = "bte,bse->bts"}> : () -> ()
    %cst_17 = arith.constant dense<0.000000e+00> : vector<2x8x8xf32>
    %24 = tpu.matmul %19, %21, %cst_17 {dimension_numbers = #tpu.dot_dimension_numbers<[2], [2], [1], [1], [0, 0, 0, 1, 1, 1], [0], [0]>} : vector<2x8x32xbf16>, vector<2x8x32xbf16>, vector<2x8x8xf32> -> vector<2x8x8xf32>
    %cst_18 = arith.constant 5.000000e-01 : f32
    "tpu.trace_stop"() : () -> ()
    %25 = vector.broadcast %cst_18 : f32 to vector<2x1x8xf32>
    %26 = arith.cmpf ogt, %1, %25 : vector<2x1x8xf32>
    %cst_19 = arith.constant -1.000000e+30 : f32
    %27 = vector.shape_cast %26 : vector<2x1x8xi1> to vector<2x1x8xi1>
    %28 = vector.broadcast %27 : vector<2x1x8xi1> to vector<2x8x8xi1>
    %29 = vector.broadcast %cst_19 : f32 to vector<2x8x8xf32>
    %30 = arith.select %28, %29, %24 : vector<2x8x8xi1>, vector<2x8x8xf32>
    %cst_20 = arith.constant dense<0xFF800000> : vector<2x8xf32>
    %31 = vector.multi_reduction <maximumf>, %30, %cst_20 [2] : vector<2x8x8xf32> to vector<2x8xf32>
    %32 = vector.shape_cast %31 : vector<2x8xf32> to vector<2x8x1xf32>
    %33 = vector.broadcast %32 : vector<2x8x1xf32> to vector<2x8x8xf32>
    %34 = arith.subf %30, %33 : vector<2x8x8xf32>
    %35 = math.exp %34 : vector<2x8x8xf32>
    %cst_21 = arith.constant dense<0.000000e+00> : vector<2x8xf32>
    %36 = vector.multi_reduction <add>, %35, %cst_21 [2] : vector<2x8x8xf32> to vector<2x8xf32>
    %37 = vector.shape_cast %36 : vector<2x8xf32> to vector<2x8x1xf32>
    %38 = tpu.reciprocal %37 {approx = true} : vector<2x8x1xf32> -> vector<2x8x1xf32>
    %39 = vector.broadcast %38 : vector<2x8x1xf32> to vector<2x8x8xf32>
    %40 = arith.mulf %35, %39 : vector<2x8x8xf32>
    %41 = arith.truncf %40 : vector<2x8x8xf32> to vector<2x8x8xbf16>
    "tpu.trace_start"() <{level = 10 : i32, message = "bts,bse->bte"}> : () -> ()
    %cst_22 = arith.constant dense<0.000000e+00> : vector<2x8x32xf32>
    %42 = tpu.matmul %41, %23, %cst_22 {dimension_numbers = #tpu.dot_dimension_numbers<[2], [1], [1], [2], [0, 0, 0, 1, 1, 2], [0], [0]>} : vector<2x8x8xbf16>, vector<2x8x32xbf16>, vector<2x8x32xf32> -> vector<2x8x32xf32>
    "tpu.trace_stop"() : () -> ()
    %43 = vector.shape_cast %42 : vector<2x8x32xf32> to vector<16x32xf32>
    %44 = arith.truncf %43 : vector<16x32xf32> to vector<16x32xbf16>
    %c0_23 = arith.constant 0 : index
    %c0_24 = arith.constant 0 : index
    %45 = vector.load %arg10[%c0_23, %c0_24] : memref<32x32xbf16, #tpu.memory_space<vmem>>, vector<32x32xbf16>
    %cst_25 = arith.constant dense<0.000000e+00> : vector<16x32xf32>
    %46 = tpu.matmul %44, %45, %cst_25 {dimension_numbers = #tpu.dot_dimension_numbers<[1], [0], [0], [1], [0, 0, 1, 1], [], []>} : vector<16x32xbf16>, vector<32x32xbf16>, vector<16x32xf32> -> vector<16x32xf32>
    %c0_26 = arith.constant 0 : index
    %c0_27 = arith.constant 0 : index
    %47 = vector.load %arg11[%c0_26, %c0_27] : memref<1x32xf32, #tpu.memory_space<vmem>>, vector<1x32xf32>
    %48 = vector.broadcast %47 : vector<1x32xf32> to vector<16x32xf32>
    %49 = arith.addf %46, %48 : vector<16x32xf32>
    %50 = arith.addf %2, %49 : vector<16x32xf32>
    %cst_28 = arith.constant dense<0.000000e+00> : vector<16xf32>
    %51 = vector.multi_reduction <add>, %50, %cst_28 [1] : vector<16x32xf32> to vector<16xf32>
    %52 = vector.shape_cast %51 : vector<16xf32> to vector<16x1xf32>
    %cst_29 = arith.constant 3.200000e+01 : f32
    %53 = vector.broadcast %cst_29 : f32 to vector<16x1xf32>
    %54 = arith.divf %52, %53 : vector<16x1xf32>
    %55 = vector.broadcast %54 : vector<16x1xf32> to vector<16x32xf32>
    %56 = arith.subf %50, %55 : vector<16x32xf32>
    %57 = arith.mulf %56, %56 : vector<16x32xf32>
    %cst_30 = arith.constant dense<0.000000e+00> : vector<16xf32>
    %58 = vector.multi_reduction <add>, %57, %cst_30 [1] : vector<16x32xf32> to vector<16xf32>
    %59 = vector.shape_cast %58 : vector<16xf32> to vector<16x1xf32>
    %cst_31 = arith.constant 3.200000e+01 : f32
    %60 = vector.broadcast %cst_31 : f32 to vector<16x1xf32>
    %61 = arith.divf %59, %60 : vector<16x1xf32>
    %62 = vector.broadcast %54 : vector<16x1xf32> to vector<16x32xf32>
    %63 = arith.subf %50, %62 : vector<16x32xf32>
    %cst_32 = arith.constant 9.99999974E-6 : f32
    %64 = vector.broadcast %cst_32 : f32 to vector<16x1xf32>
    %65 = arith.addf %61, %64 : vector<16x1xf32>
    %66 = math.rsqrt %65 : vector<16x1xf32>
    %67 = vector.broadcast %66 : vector<16x1xf32> to vector<16x32xf32>
    %68 = arith.mulf %63, %67 : vector<16x32xf32>
    %c0_33 = arith.constant 0 : index
    %c0_34 = arith.constant 0 : index
    %69 = vector.load %arg12[%c0_33, %c0_34] : memref<1x32xf32, #tpu.memory_space<vmem>>, vector<1x32xf32>
    %70 = vector.broadcast %69 : vector<1x32xf32> to vector<16x32xf32>
    %71 = arith.mulf %68, %70 : vector<16x32xf32>
    %c0_35 = arith.constant 0 : index
    %c0_36 = arith.constant 0 : index
    %72 = vector.load %arg13[%c0_35, %c0_36] : memref<1x32xf32, #tpu.memory_space<vmem>>, vector<1x32xf32>
    %73 = vector.broadcast %72 : vector<1x32xf32> to vector<16x32xf32>
    %74 = arith.addf %71, %73 : vector<16x32xf32>
    %75 = arith.truncf %74 : vector<16x32xf32> to vector<16x32xbf16>
    %c0_37 = arith.constant 0 : index
    %c0_38 = arith.constant 0 : index
    %76 = vector.load %arg14[%c0_37, %c0_38] : memref<32x32xbf16, #tpu.memory_space<vmem>>, vector<32x32xbf16>
    %cst_39 = arith.constant dense<0.000000e+00> : vector<16x32xf32>
    %77 = tpu.matmul %75, %76, %cst_39 {dimension_numbers = #tpu.dot_dimension_numbers<[1], [0], [0], [1], [0, 0, 1, 1], [], []>} : vector<16x32xbf16>, vector<32x32xbf16>, vector<16x32xf32> -> vector<16x32xf32>
    %c0_40 = arith.constant 0 : index
    %c0_41 = arith.constant 0 : index
    %78 = vector.load %arg15[%c0_40, %c0_41] : memref<1x32xf32, #tpu.memory_space<vmem>>, vector<1x32xf32>
    %79 = vector.broadcast %78 : vector<1x32xf32> to vector<16x32xf32>
    %80 = arith.addf %77, %79 : vector<16x32xf32>
    %81 = math.tanh %80 : vector<16x32xf32>
    %82 = arith.truncf %81 : vector<16x32xf32> to vector<16x32xbf16>
    %c0_42 = arith.constant 0 : index
    %c0_43 = arith.constant 0 : index
    %83 = vector.load %arg16[%c0_42, %c0_43] : memref<32x256xbf16, #tpu.memory_space<vmem>>, vector<32x256xbf16>
    %cst_44 = arith.constant dense<0.000000e+00> : vector<16x256xf32>
    %84 = tpu.matmul %82, %83, %cst_44 {dimension_numbers = #tpu.dot_dimension_numbers<[1], [0], [0], [1], [0, 0, 1, 1], [], []>} : vector<16x32xbf16>, vector<32x256xbf16>, vector<16x256xf32> -> vector<16x256xf32>
    %c0_45 = arith.constant 0 : index
    %c0_46 = arith.constant 0 : index
    %85 = vector.load %arg17[%c0_45, %c0_46] : memref<1x256xf32, #tpu.memory_space<vmem>>, vector<1x256xf32>
    %86 = vector.broadcast %85 : vector<1x256xf32> to vector<16x256xf32>
    %87 = arith.addf %84, %86 : vector<16x256xf32>
    %88 = vector.extract_strided_slice %87 {offsets = [0, 0], sizes = [16, 128], strides = [1, 1]} : vector<16x256xf32> to vector<16x128xf32>
    %cst_47 = arith.constant dense<0xFF800000> : vector<16xf32>
    %89 = vector.multi_reduction <maximumf>, %88, %cst_47 [1] : vector<16x128xf32> to vector<16xf32>
    %90 = vector.shape_cast %89 : vector<16xf32> to vector<16x1xf32>
    %91 = vector.broadcast %90 : vector<16x1xf32> to vector<16x128xf32>
    %92 = arith.subf %88, %91 : vector<16x128xf32>
    %93 = math.exp %92 : vector<16x128xf32>
    %cst_48 = arith.constant dense<0.000000e+00> : vector<16xf32>
    %94 = vector.multi_reduction <add>, %93, %cst_48 [1] : vector<16x128xf32> to vector<16xf32>
    %95 = vector.shape_cast %94 : vector<16xf32> to vector<16x1xf32>
    %96 = tpu.reciprocal %95 {approx = true} : vector<16x1xf32> -> vector<16x1xf32>
    %97 = vector.broadcast %96 : vector<16x1xf32> to vector<16x128xf32>
    %98 = arith.mulf %93, %97 : vector<16x128xf32>
    %99 = vector.extract_strided_slice %98 {offsets = [0, 0], sizes = [16, 1], strides = [1, 1]} : vector<16x128xf32> to vector<16x1xf32>
    %100 = vector.extract_strided_slice %98 {offsets = [0, 1], sizes = [16, 1], strides = [1, 1]} : vector<16x128xf32> to vector<16x1xf32>
    %101 = vector.extract_strided_slice %87 {offsets = [0, 128], sizes = [16, 128], strides = [1, 1]} : vector<16x256xf32> to vector<16x128xf32>
    %cst_49 = arith.constant dense<0xFF800000> : vector<16xf32>
    %102 = vector.multi_reduction <maximumf>, %101, %cst_49 [1] : vector<16x128xf32> to vector<16xf32>
    %103 = vector.shape_cast %102 : vector<16xf32> to vector<16x1xf32>
    %104 = vector.broadcast %103 : vector<16x1xf32> to vector<16x128xf32>
    %105 = arith.subf %101, %104 : vector<16x128xf32>
    %106 = math.exp %105 : vector<16x128xf32>
    %107 = vector.broadcast %99 : vector<16x1xf32> to vector<16x128xf32>
    %108 = arith.mulf %107, %106 : vector<16x128xf32>
    %cst_50 = arith.constant dense<0.000000e+00> : vector<16xf32>
    %109 = vector.multi_reduction <add>, %106, %cst_50 [1] : vector<16x128xf32> to vector<16xf32>
    %110 = vector.shape_cast %109 : vector<16xf32> to vector<16x1xf32>
    %111 = tpu.reciprocal %110 {approx = true} : vector<16x1xf32> -> vector<16x1xf32>
    %112 = vector.broadcast %111 : vector<16x1xf32> to vector<16x128xf32>
    %113 = arith.mulf %108, %112 : vector<16x128xf32>
    %114 = vector.shape_cast %100 : vector<16x1xf32> to vector<2x8x1xf32>
    %115 = vector.broadcast %114 : vector<2x8x1xf32> to vector<2x8x8xf32>
    %116 = arith.mulf %115, %40 : vector<2x8x8xf32>
    %c0_51 = arith.constant 0 : index
    %c0_52 = arith.constant 0 : index
    %c0_53 = arith.constant 0 : index
    %117 = vector.load %arg4[%c0_51, %c0_52, %c0_53] : memref<2x8x1xi32, #tpu.memory_space<vmem>>, vector<2x8x1xi32>
    %118 = tpu.iota {dimensions = array<i32: 2>} : vector<1x1x128xi32>
    %cst_54 = arith.constant 0.000000e+00 : f32
    %119 = vector.broadcast %cst_54 : f32 to vector<2x8x128xf32>
    %120 = vector.broadcast %117 : vector<2x8x1xi32> to vector<2x8x128xi32>
    %121 = vector.broadcast %118 : vector<1x1x128xi32> to vector<2x8x128xi32>
    %122 = arith.cmpi eq, %120, %121 : vector<2x8x128xi32>
    %123 = arith.extui %122 : vector<2x8x128xi1> to vector<2x8x128xi32>
    %124 = arith.sitofp %123 : vector<2x8x128xi32> to vector<2x8x128xf32>
    %125 = arith.truncf %124 : vector<2x8x128xf32> to vector<2x8x128xbf16>
    %126 = arith.truncf %116 : vector<2x8x8xf32> to vector<2x8x8xbf16>
    "tpu.trace_start"() <{level = 10 : i32, message = "bts,bsv->btv"}> : () -> ()
    %cst_55 = arith.constant dense<0.000000e+00> : vector<2x8x128xf32>
    %127 = tpu.matmul %126, %125, %cst_55 {dimension_numbers = #tpu.dot_dimension_numbers<[2], [1], [1], [2], [0, 0, 0, 1, 1, 2], [0], [0]>} : vector<2x8x8xbf16>, vector<2x8x128xbf16>, vector<2x8x128xf32> -> vector<2x8x128xf32>
    "tpu.trace_stop"() : () -> ()
    %128 = arith.addf %119, %127 : vector<2x8x128xf32>
    %129 = vector.shape_cast %113 : vector<16x128xf32> to vector<2x8x128xf32>
    %130 = arith.addf %129, %128 : vector<2x8x128xf32>
    %cst_56 = arith.constant 9.99999996E-13 : f32
    %131 = vector.broadcast %cst_56 : f32 to vector<2x8x128xf32>
    %132 = arith.addf %130, %131 : vector<2x8x128xf32>
    %133 = math.log %132 : vector<2x8x128xf32>
    %c0_57 = arith.constant 0 : index
    %c0_58 = arith.constant 0 : index
    %c0_59 = arith.constant 0 : index
    %134 = vector.load %arg18[%c0_57, %c0_58, %c0_59] : memref<2x8x128xf32, #tpu.memory_space<vmem>>, vector<2x8x128xf32>
    tpu.vector_store %arg18[%c0_57, %c0_58, %c0_59], %133 {strides = array<i32>} : memref<2x8x128xf32, #tpu.memory_space<vmem>>, vector<2x8x128xf32>,
    %c0_60 = arith.constant 0 : index
    %c0_61 = arith.constant 0 : index
    %c0_62 = arith.constant 0 : index
    %135 = vector.load %arg5[%c0_60, %c0_61, %c0_62] : memref<2x8x1xi32, #tpu.memory_space<vmem>>, vector<2x8x1xi32>
    %136 = vector.broadcast %135 : vector<2x8x1xi32> to vector<2x8x128xi32>
    %137 = vector.broadcast %118 : vector<1x1x128xi32> to vector<2x8x128xi32>
    %138 = arith.cmpi eq, %136, %137 : vector<2x8x128xi32>
    %cst_63 = arith.constant 0.000000e+00 : f32
    %139 = vector.broadcast %cst_63 : f32 to vector<2x8x128xf32>
    %140 = arith.select %138, %133, %139 : vector<2x8x128xi1>, vector<2x8x128xf32>
    %cst_64 = arith.constant dense<0.000000e+00> : vector<2x8xf32>
    %141 = vector.multi_reduction <add>, %140, %cst_64 [2] : vector<2x8x128xf32> to vector<2x8xf32>
    %142 = vector.shape_cast %141 : vector<2x8xf32> to vector<2x8x1xf32>
    %c0_i32 = arith.constant 0 : i32
    %143 = vector.broadcast %c0_i32 : i32 to vector<2x8x1xi32>
    %144 = arith.cmpi eq, %135, %143 : vector<2x8x1xi32>
    %cst_65 = arith.constant 0.000000e+00 : f32
    %145 = vector.broadcast %cst_65 : f32 to vector<2x8x1xf32>
    %146 = arith.subf %145, %142 : vector<2x8x1xf32>
    %cst_66 = arith.constant 0.000000e+00 : f32
    %147 = vector.broadcast %cst_66 : f32 to vector<2x8x1xf32>
    %148 = arith.select %144, %147, %146 : vector<2x8x1xi1>, vector<2x8x1xf32>
    %cst_67 = arith.constant dense<0.000000e+00> : vector<2x1xf32>
    %149 = vector.multi_reduction <add>, %148, %cst_67 [1] : vector<2x8x1xf32> to vector<2x1xf32>
    %150 = vector.shape_cast %149 : vector<2x1xf32> to vector<2x1x1xf32>
    %c0_68 = arith.constant 0 : index
    %c0_69 = arith.constant 0 : index
    %c0_70 = arith.constant 0 : index
    %151 = vector.load %arg19[%c0_68, %c0_69, %c0_70] : memref<2x1x1xf32, #tpu.memory_space<vmem>>, vector<2x1x1xf32>
    tpu.vector_store %arg19[%c0_68, %c0_69, %c0_70], %150 {strides = array<i32>} : memref<2x1x1xf32, #tpu.memory_space<vmem>>, vector<2x1x1xf32>,
    return
  }
  func.func @transform_0(%arg0: i32) -> (i32, i32, i32) {
    %c0_i32 = arith.constant 0 : i32
    %c0_i32_0 = arith.constant 0 : i32
    %c0_i32_1 = arith.constant 0 : i32
    return %arg0, %c0_i32, %c0_i32_0 : i32, i32, i32
  }
  func.func @transform_1(%arg0: i32) -> (i32, i32, i32) {
    %c0_i32 = arith.constant 0 : i32
    %c0_i32_0 = arith.constant 0 : i32
    %c0_i32_1 = arith.constant 0 : i32
    return %arg0, %c0_i32, %c0_i32_0 : i32, i32, i32
  }
  func.func @transform_2(%arg0: i32) -> (i32, i32, i32) {
    %c0_i32 = arith.constant 0 : i32
    %c0_i32_0 = arith.constant 0 : i32
    %c0_i32_1 = arith.constant 0 : i32
    return %arg0, %c0_i32, %c0_i32_0 : i32, i32, i32
  }
  func.func @transform_3(%arg0: i32) -> (i32, i32, i32) {
    %c0_i32 = arith.constant 0 : i32
    %c0_i32_0 = arith.constant 0 : i32
    %c0_i32_1 = arith.constant 0 : i32
    return %arg0, %c0_i32, %c0_i32_0 : i32, i32, i32
  }
  func.func @transform_4(%arg0: i32) -> (i32, i32, i32) {
    %c0_i32 = arith.constant 0 : i32
    %c0_i32_0 = arith.constant 0 : i32
    %c0_i32_1 = arith.constant 0 : i32
    return %arg0, %c0_i32, %c0_i32_0 : i32, i32, i32
  }
  func.func @transform_5(%arg0: i32) -> (i32, i32) {
    %c0_i32 = arith.constant 0 : i32
    %c0_i32_0 = arith.constant 0 : i32
    %c0_i32_1 = arith.constant 0 : i32
    return %c0_i32, %c0_i32_0 : i32, i32
  }
  func.func @transform_6(%arg0: i32) -> (i32, i32) {
    %c0_i32 = arith.constant 0 : i32
    %c0_i32_0 = arith.constant 0 : i32
    %c0_i32_1 = arith.constant 0 : i32
    return %c0_i32, %c0_i32_0 : i32, i32
  }
  func.func @transform_7(%arg0: i32) -> (i32, i32) {
    %c0_i32 = arith.constant 0 : i32
    %c0_i32_0 = arith.constant 0 : i32
    %c0_i32_1 = arith.constant 0 : i32
    return %c0_i32, %c0_i32_0 : i32, i32
  }
  func.func @transform_8(%arg0: i32) -> (i32, i32) {
    %c0_i32 = arith.constant 0 : i32
    %c0_i32_0 = arith.constant 0 : i32
    %c0_i32_1 = arith.constant 0 : i32
    return %c0_i32, %c0_i32_0 : i32, i32
  }
  func.func @transform_9(%arg0: i32) -> (i32, i32) {
    %c0_i32 = arith.constant 0 : i32
    %c0_i32_0 = arith.constant 0 : i32
    %c0_i32_1 = arith.constant 0 : i32
    return %c0_i32, %c0_i32_0 : i32, i32
  }
  func.func @transform_10(%arg0: i32) -> (i32, i32) {
    %c0_i32 = arith.constant 0 : i32
    %c0_i32_0 = arith.constant 0 : i32
    %c0_i32_1 = arith.constant 0 : i32
    return %c0_i32, %c0_i32_0 : i32, i32
  }
  func.func @transform_11(%arg0: i32) -> (i32, i32) {
    %c0_i32 = arith.constant 0 : i32
    %c0_i32_0 = arith.constant 0 : i32
    %c0_i32_1 = arith.constant 0 : i32
    return %c0_i32, %c0_i32_0 : i32, i32
  }
  func.func @transform_12(%arg0: i32) -> (i32, i32) {
    %c0_i32 = arith.constant 0 : i32
    %c0_i32_0 = arith.constant 0 : i32
    %c0_i32_1 = arith.constant 0 : i32
    return %c0_i32, %c0_i32_0 : i32, i32
  }
  func.func @transform_13(%arg0: i32) -> (i32, i32) {
    %c0_i32 = arith.constant 0 : i32
    %c0_i32_0 = arith.constant 0 : i32
    %c0_i32_1 = arith.constant 0 : i32
    return %c0_i32, %c0_i32_0 : i32, i32
  }
  func.func @transform_14(%arg0: i32) -> (i32, i32) {
    %c0_i32 = arith.constant 0 : i32
    %c0_i32_0 = arith.constant 0 : i32
    %c0_i32_1 = arith.constant 0 : i32
    return %c0_i32, %c0_i32_0 : i32, i32
  }
  func.func @transform_15(%arg0: i32) -> (i32, i32) {
    %c0_i32 = arith.constant 0 : i32
    %c0_i32_0 = arith.constant 0 : i32
    %c0_i32_1 = arith.constant 0 : i32
    return %c0_i32, %c0_i32_0 : i32, i32
  }
  func.func @transform_16(%arg0: i32) -> (i32, i32) {
    %c0_i32 = arith.constant 0 : i32
    %c0_i32_0 = arith.constant 0 : i32
    %c0_i32_1 = arith.constant 0 : i32
    return %c0_i32, %c0_i32_0 : i32, i32
  }
  func.func @transform_17(%arg0: i32) -> (i32, i32, i32) {
    %c0_i32 = arith.constant 0 : i32
    %c0_i32_0 = arith.constant 0 : i32
    %c0_i32_1 = arith.constant 0 : i32
    return %arg0, %c0_i32, %c0_i32_0 : i32, i32, i32
  }
  func.func @transform_18(%arg0: i32) -> (i32, i32, i32) {
    %c0_i32 = arith.constant 0 : i32
    %c0_i32_0 = arith.constant 0 : i32
    %c0_i32_1 = arith.constant 0 : i32
    return %arg0, %c0_i32, %c0_i32_0 : i32, i32, i32
  }
}

</mosaic_0001>

<bundles_post_ra>
// kernel: tpu_custom_call.1
= control target key start
LH: loop header
LB: loop body
LE: loop exit
PB: predicated region body
PF: predicated region fallthrough
CT: control target
= control target key end

     0   :  { %s1369_s0 = inlined_call_operand.hbm [shape: f32[2,8,32], index: 0, kind: input, shape index: {}]   ;;  %s1370_s1 = inlined_call_operand.hbm [shape: bf16[2,8,32], index: 1, kind: input, shape index: {}]   ;;  %s1371_s2 = inlined_call_operand.vmem [shape: f32[2,1,8], index: 2, kind: input, shape index: {}]   ;;  %s1372_s3 = inlined_call_operand.vmem [shape: s32[2,8,1], index: 3, kind: input, shape index: {}]   ;;  %s1373_s4 = inlined_call_operand.vmem [shape: s32[2,8,1], index: 4, kind: input, shape index: {}]   ;;  %s1374_s5 = inlined_call_operand.hbm [shape: bf16[32,32], index: 5, kind: input, shape index: {}]   ;;  %s1375_s6 = inlined_call_operand.vmem [shape: f32[1,32], index: 6, kind: input, shape index: {}]   ;;  %s1376_s7 = inlined_call_operand.hbm [shape: bf16[32,64], index: 7, kind: input, shape index: {}]   ;;  %s1377_s8 = inlined_call_operand.vmem [shape: f32[1,64], index: 8, kind: input, shape index: {}]   ;;  %s1378_s9 = inlined_call_operand.hbm [shape: bf16[32,32], index: 9, kind: input, shape index: {}]   ;;  %s1379_s10 = inlined_call_operand.vmem [shape: f32[1,32], index: 10, kind: input, shape index: {}]   ;;  %s1380_s11 = inlined_call_operand.vmem [shape: f32[1,32], index: 11, kind: input, shape index: {}]   ;;  %s1381_s12 = inlined_call_operand.vmem [shape: f32[1,32], index: 12, kind: input, shape index: {}]   ;;  %s1382_s13 = inlined_call_operand.hbm [shape: bf16[32,32], index: 13, kind: input, shape index: {}]   ;;  %s1383_s14 = inlined_call_operand.vmem [shape: f32[1,32], index: 14, kind: input, shape index: {}]   ;;  %s1384_s15 = inlined_call_operand.vmem [shape: bf16[32,256], index: 15, kind: input, shape index: {}]   ;;  %s1385_s16 = inlined_call_operand.vmem [shape: f32[1,256], index: 16, kind: input, shape index: {}]   ;;  %s1386_s17 = inlined_call_operand.hbm [shape: f32[2,8,128], index: 17, kind: output, shape index: {0}]   ;;  %s1387_s18 = inlined_call_operand.vmem [shape: f32[2,1,1], index: 18, kind: output, shape index: {1}]  }
   0x1   :  { %1389 = sst [smem:[#allocation19_spill]] %s1369_s0 }
   0x2   :  { %1390 = sst [smem:[#allocation20_spill]] %s1370_s1 }
   0x3   :  { %1391 = sst [smem:[#allocation21_spill]] %s1371_s2 }
   0x4   :  { %24 = vsyncpa [#allocation3], 0 }
   0x5   :  { %25 = vsyncpa [#allocation6], 0 }
   0x6   :  { %26 = vsyncpa [#allocation9], 0 }
   0x7   :  { %27 = vsyncpa [#allocation12], 0  ;;  %s1392_s29 = sld [smem:[#allocation20_spill]] }
   0xd   :  { %s46_s30 = sshll.u32 %s1392_s29, 4  ;;  %s47_s30 = int_to_ptr.hbm [resolvable:$true] %s46_s30 }
   0xe   :  { %28 = vsyncpa [#allocation4], 0  ;;  %s1087_s0 = smov [#allocation5]   ;;  %s80_s21 = sshll.u32 %s1376_s7, 4  ;;  %s81_s21 = int_to_ptr.hbm [resolvable:$true] %s80_s21 }
   0xf   :  { %s48_s19 = sshll.u32 %s1087_s0, 4  ;;  %s1088_s22 = smov 64   ;;  %s49_s19 = int_to_ptr.vmem [resolvable:$true] %s48_s19 }
  0x10   :  { %s1089_s2 = smov 4   ;;  %s1090_s23 = smov [#allocation8]  }
  0x11   :  { %54 = dma.hbm_to_vmem [thread:$0]  %s47_s30, 128, %s49_s19, [#allocation6], %s1088_s22, %s1088_s22, %s1089_s2  }
  0x12   :  { %s82_s24 = sshll.u32 %s1090_s23, 4  ;;  %s1393_s27 = sld [smem:[#allocation19_spill]]  ;;  %s83_s24 = int_to_ptr.vmem [resolvable:$true] %s82_s24 }
  0x13   :  { %88 = dma.hbm_to_vmem [thread:$0]  %s81_s21, 256, %s83_s24, [#allocation9], %s1088_s22, %s1088_s22, %s1089_s2  }
  0x14   :  { %s1091_s7 = smov [#allocation2]   ;;  %s65_s30 = sshll.u32 %s1374_s5, 4  ;;  %s66_s30 = int_to_ptr.hbm [resolvable:$true] %s65_s30 }
  0x15   :  { %s35_s29 = sshll.u32 %s1091_s7, 4  ;;  %s1092_s19 = smov 128   ;;  %s36_s29 = int_to_ptr.vmem [resolvable:$true] %s35_s29 }
  0x16   :  { %s1093_s20 = smov 8   ;;  %s1094_s23 = smov [#allocation7]  }
  0x17   :  { %s67_s25 = sshll.u32 %s1094_s23, 4  ;;  %s95_s21 = sshll.u32 %s1378_s9, 4  ;;  %s68_s25 = int_to_ptr.vmem [resolvable:$true] %s67_s25  ;;  %s96_s21 = int_to_ptr.hbm [resolvable:$true] %s95_s21 }
  0x18   :  { %s33_s28 = sshll.u32 %s1393_s27, 4  ;;  %s114_s7 = sshll.u32 %s1382_s13, 4  ;;  %s34_s28 = int_to_ptr.hbm [resolvable:$true] %s33_s28  ;;  %s115_s7 = int_to_ptr.hbm [resolvable:$true] %s114_s7 }
  0x19   :  { %41 = dma.hbm_to_vmem [thread:$0]  %s34_s28, 256, %s36_s29, [#allocation3], %s1092_s19, %s1092_s19, %s1093_s20  }
  0x1a   :  { %73 = dma.hbm_to_vmem [thread:$0]  %s66_s30, 256, %s68_s25, [#allocation6], %s1088_s22, %s1088_s22, %s1089_s2  }
  0x1b   :  { %s1095_s0 = smov [#allocation10]   ;;  %s1096_s28 = smov [#allocation11]  }
  0x1c   :  { %s97_s1 = sshll.u32 %s1095_s0, 4  ;;  %s116_s9 = sshll.u32 %s1096_s28, 4  ;;  %s98_s1 = int_to_ptr.vmem [resolvable:$true] %s97_s1  ;;  %s117_s9 = int_to_ptr.vmem [resolvable:$true] %s116_s9 }
  0x1d   :  { %103 = dma.hbm_to_vmem [thread:$0]  %s96_s21, 256, %s98_s1, [#allocation9], %s1088_s22, %s1088_s22, %s1089_s2  }
  0x1e   :  { %122 = dma.hbm_to_vmem [thread:$0]  %s115_s7, 256, %s117_s9, [#allocation12], %s1088_s22, %s1088_s22, %s1089_s2  }
  0x1f   :  { %1077 = dma.done.wait [#allocation3], 256  }
  0x20   :  { %1078 = vsyncadd [#allocation3], 4294967040 }
  0x21   :  { %1079 = dma.done.wait [#allocation6], 384  }
  0x22   :  { %1080 = vsyncadd [#allocation6], 4294966912 }
  0x23   :  { %1081 = dma.done.wait [#allocation9], 512  }
  0x24   :  { %1082 = vsyncadd [#allocation9], 4294966784 }
  0x25   :  { %1083 = dma.done.wait [#allocation12], 256  }
  0x26   :  { %1084 = vsyncadd [#allocation12], 4294967040  ;;  %v832_v0 = vld [vmem:[#allocation7 + $0x8] sm:$0xff]  ;;  %v834_v1 = vld [vmem:[#allocation8 + $0x8] sm:$0xff]  ;;  %vm181_vm0 = vcmask 261120   ;;  %s1097_s30 = smov 96  }
  0x27   :  { %v831_v2 = vld [vmem:[#allocation7] sm:$0xff]  ;;  %v833_v3 = vld [vmem:[#allocation8] sm:$0xff]  ;;  %191 = vmatpush.bf16.msra.mxu0 %v832_v0  ;;  %233 = vmatpush.bf16.msra.mxu1 %v834_v1  ;;  %v1234_v4 = vld [vmem:[#allocation2] sm:$0xff]  ;;  %vm326_vm1 = vcmask 1043456   ;;  %v1098_v32 = vmov 0   ;;  %s1394_s23 = sld [smem:[#allocation21_spill]] }
  0x28   :  { %v1236_v5 = vld [vmem:[#allocation2 + $0x8] sm:$0xff]  ;;  %v830_v7 = vld [vmem:[#allocation5] sm:$0xff]  ;;  %v866_v8 = vld [vmem:[%s1377_s8] ss:$0 sm:$0xff]  ;;  %859 = vset.pattern.permute.xlu1 %v1098_v32  ;;  %860 = vset.pattern.permute.xlu0 %v1098_v32  ;;  %vm293_vm5 = vcmask 64512   ;;  %s744_s13 = sshll.u32 %s1386_s17, 4  ;;  %s745_s13 = int_to_ptr.hbm [resolvable:$true] %s744_s13 }
  0x29   :  { %v160_v6 = vpack.c.bf16 %v1236_v5, %v1234_v4  ;;  %v865_v10 = vld [vmem:[%s1375_s6] ss:$0 sm:$0xff] }
  0x2a   :  { %v836_v57 = vld [vmem:[#allocation10 + $0x8] sm:$0xff] }
  0x2b   :  { %192 = vmatpush.bf16.msra.mxu0 %v831_v2  ;;  %234 = vmatpush.bf16.msra.mxu1 %v833_v3  ;;  %v835_v2 = vld [vmem:[#allocation10] sm:$0xff] }
  0x2d   :  { %v156_v33 = vld [vmem:[%s1394_s23] sm:$0x1]  ;;  %v157_v35 = vld [vmem:[%s1394_s23 + $0x1] sm:$0x1] }
  0x2e   :  { %772 = vmatmul.msk.bf16.vlgmr.msra.gmra.mxu0 %vm181_vm0, %v160_v6  ;;  %785 = vmatmul.msk.bf16.vlgmr.msra.gmra.mxu1 %vm181_vm0, %v830_v7  ;;  %vm283_vm2 = vcmp.gt.f32.partialorder %v156_v33, 0.5  ;;  %vm284_vm3 = vcmp.gt.f32.partialorder %v157_v35, 0.5  ;;  %v838_v35 = vld [vmem:[#allocation11 + $0x8] sm:$0xff] }
  0x2f   :  { %v285_v34 = vsel %vm283_vm2, 1, %v1098_v32  ;;  %v286_v37 = vsel %vm284_vm3, 1, %v1098_v32  ;;  %vm720_vm3 = vcmask 7168  }
  0x30   :  { %v287_v36 = vperm.slane %v285_v34, 0  ;;  %v288_v41 = vperm.slane %v286_v37, 0  ;;  %v837_v37 = vld [vmem:[#allocation11] sm:$0xff] }
  0x32   :  { %vm289_vm4 = vcmp.eq.s32.totalorder %v287_v36, 1  ;;  %vm290_vm6 = vcmp.eq.s32.totalorder %v288_v41, 1 }
  0xab   :  { %v236_v9 = vpop.f32.mrf.mxu1  ;;  %v194_v12 = vpop.f32.mrf.mxu0 }
  0xac   :  { %v237_v11 = vadd.f32 %v866_v8, %v236_v9  ;;  %v195_v14 = vadd.f32 %v865_v10, %v194_v12 }
  0xae   :  { %v243_v13 = vpack.c.bf16 %v237_v11, %v237_v11  ;;  %v241_v19 = vpack.c.bf16 %v195_v14, %v195_v14 }
  0xb0   :  { %v249_v15 = vsel %vm181_vm0, %v243_v13, 0  ;;  %v319_v16 = vunpack.c.l.b16 %v243_v13 }
  0xb1   :  { %258 = vmatpush.bf16.xpose.msra.mxu2 %v249_v15 }
  0xb2   :  { %v320_v17 = vpack.c.b16 %v319_v16, %v319_v16 }
  0xb3   :  { %v238_v18 = vpop.f32.mrf.mxu1  ;;  %v196_v22 = vpop.f32.mrf.mxu0 }
  0xb4   :  { %v239_v20 = vadd.f32 %v866_v8, %v238_v18  ;;  %321 = vrot.lane.b32.xlu2 %v320_v17, %s1097_s30  ;;  %v197_v25 = vadd.f32 %v865_v10, %v196_v22  ;;  %v867_v10 = vld [vmem:[%s1379_s10] ss:$0 sm:$0xff] }
  0xb6   :  { %v244_v21 = vpack.c.bf16 %v239_v20, %v239_v20  ;;  %v242_v27 = vpack.c.bf16 %v197_v25, %v197_v25 }
  0xb8   :  { %v344_v23 = vunpack.c.l.b16 %v244_v21  ;;  %786 = vmatmul.msk.bf16.vlgmr.msra.gmra.mxu2 %vm181_vm0, %v241_v19  ;;  %v268_v24 = vsel %vm181_vm0, %v244_v21, 0  ;;  %v1099_v19 = vmov 32.0  }
  0xb9   :  { %277 = vmatpush.bf16.xpose.msra.mxu3 %v268_v24  ;;  %397 = vmatpush.bf16.msrb.mxu2 %v836_v57 }
  0xba   :  { %v345_v26 = vpack.c.b16 %v344_v23, %v344_v23 }
  0xbc   :  { %346 = vrot.lane.b32.xlu2 %v345_v26, %s1097_s30 }
  0xbd   :  { %398 = vmatpush.bf16.msrb.mxu2 %v835_v2 }
  0xc0   :  { %787 = vmatmul.msk.bf16.vlgmr.msra.gmra.mxu3 %vm181_vm0, %v242_v27 }
  0xc1   :  { %500 = vmatpush.bf16.msrb.mxu3 %v838_v35 }
  0xc5   :  { %501 = vmatpush.bf16.msrb.mxu3 %v837_v37 }
 0x10e   :  { %v322_v28 = vpop.permute.xlu2 %321 }
 0x10f   :  { %v328_v29 = vsel %vm326_vm1, %v322_v28, 0 }
 0x110   :  { %337 = vmatpush.bf16.msrb.mxu0 %v328_v29 }
 0x116   :  { %v347_v30 = vpop.permute.xlu2 %346 }
 0x117   :  { %v352_v31 = vsel %vm326_vm1, %v347_v30, 0 }
 0x118   :  { %361 = vmatpush.bf16.msrb.mxu1 %v352_v31 }
 0x13b   :  { %v260_v38 = vpop.f32.mrf.mxu2 }
 0x13c   :  { %v291_v39 = vsel %vm289_vm4, -1e+30, %v260_v38 }
 0x13d   :  { %v294_v40 = vsel %vm293_vm5, %v291_v39, -inf }
 0x13e   :  { %295 = vmax.xlane.f32.xlu0 %v294_v40 }
 0x143   :  { %v262_v42 = vpop.f32.mrf.mxu2  ;;  %v279_v43 = vpop.f32.mrf.mxu3 }
 0x144   :  { %v292_v44 = vsel %vm290_vm6, -1e+30, %v279_v43 }
 0x145   :  { %v297_v45 = vsel %vm293_vm5, %v292_v44, -inf }
 0x146   :  { %298 = vmax.xlane.f32.xlu0 %v297_v45 }
 0x14b   :  { %v281_v46 = vpop.f32.mrf.mxu3 }
 0x1b1   :  { %v296_v47 = vpop.xlane.xlu0 %295 }
 0x1b2   :  { %v300_v48 = vsub.f32 %v291_v39, %v296_v47 }
 0x1b4   :  { %v302_v49 = vmul.f32 1.442695, %v300_v48 }
 0x1b6   :  { %871 = vpow2.f32 %v302_v49 }
 0x1b9   :  { %v299_v50 = vpop.xlane.xlu0 %298 }
 0x1ba   :  { %v301_v51 = vsub.f32 %v292_v44, %v299_v50 }
 0x1bc   :  { %v872_v52 = vpop.eup %871  ;;  %v304_v53 = vmul.f32 1.442695, %v301_v51 }
 0x1bd   :  { %v306_v54 = vsel %vm293_vm5, %v872_v52, 0.0 }
 0x1be   :  { %873 = vpow2.f32 %v304_v53  ;;  %307 = vadd.xlane.f32.xlu1 %v306_v54 }
 0x1c4   :  { %v874_v55 = vpop.eup %873 }
 0x1c5   :  { %v309_v56 = vsel %vm293_vm5, %v874_v55, 0.0 }
 0x1c6   :  { %310 = vadd.xlane.f32.xlu1 %v309_v56  ;;  %v868_v56 = vld [vmem:[%s1380_s11] ss:$0 sm:$0xff] }
 0x231   :  { %v308_v58 = vpop.xlane.xlu1 %307 }
 0x232   :  { %875 = vrcp.f32 %v308_v58 }
 0x238   :  { %v876_v59 = vpop.eup %875 }
 0x239   :  { %v1268_v60 = vmul.f32 %v876_v59, %v872_v52  ;;  %v311_v61 = vpop.xlane.xlu1 %310 }
 0x23a   :  { %877 = vrcp.f32 %v311_v61 }
 0x23b   :  { %v316_v62 = vpack.c.bf16 %v1268_v60, %v1268_v60  ;;  %879 = vrcp.f32 %v1099_v19  ;;  %v870_v19 = vld [vmem:[%s1383_s14] ss:$0 sm:$0xff] }
 0x23d   :  { %788 = vmatmul.msk.bf16.vlgmr.msrb.gmra.mxu0 %vm293_vm5, %v316_v62  ;;  %v869_v62 = vld [vmem:[%s1381_s12] ss:$0 sm:$0xff] }
 0x240   :  { %v878_v63 = vpop.eup %877 }
 0x241   :  { %v1273_v0 = vmul.f32 %v878_v63, %v874_v55  ;;  %v880_v20 = vpop.eup %879 }
 0x242   :  { %v414_v21 = vmul.f32 32.0, %v880_v20  ;;  %vm418_vm7 = vweird.f32 %v880_v20 }
 0x243   :  { %v317_v1 = vpack.c.bf16 %v1273_v0, %v1273_v0 }
 0x244   :  { %v415_v22 = vsub.f32 1.0, %v414_v21 }
 0x245   :  { %789 = vmatmul.msk.bf16.vlgmr.msrb.gmra.mxu1 %vm293_vm5, %v317_v1 }
 0x246   :  { %v416_v23 = vmul.f32 %v880_v20, %v415_v22 }
 0x248   :  { %v417_v24 = vadd.f32 %v880_v20, %v416_v23 }
 0x24a   :  { %v419_v25 = vsel %vm418_vm7, %v880_v20, %v417_v24 }
 0x2ba   :  { %v339_v3 = vpop.f32.mrf.mxu0 }
 0x2c2   :  { %v341_v6 = vpop.f32.mrf.mxu0  ;;  %v363_v7 = vpop.f32.mrf.mxu1 }
 0x2c3   :  { %v367_v8 = vpack.c.bf16 %v363_v7, %v339_v3  ;;  %v818_v6 = vld [vmem:[%s1384_s15 + $0x10] sm:$0xf]  ;;  %v842_v7 = vld [vmem:[%s1384_s15 + $0x14] sm:$0xf0] }
 0x2c5   :  { %798 = vmatmul.msk.bf16.vlgmr.msrb.gmra.mxu2 %vm181_vm0, %v367_v8  ;;  %v819_v8 = vor.u32 %v842_v7, %v818_v6 }
 0x2c7   :  { %550 = vmatpush.bf16.msra.mxu0 %v819_v8 }
 0x2ca   :  { %v365_v9 = vpop.f32.mrf.mxu1 }
 0x2cb   :  { %v841_v9 = vld [vmem:[%s1384_s15 + $0x14] sm:$0xf] }
 0x348   :  { %v400_v11 = vpop.f32.mrf.mxu2 }
 0x349   :  { %v401_v12 = vadd.f32 %v867_v10, %v400_v11 }
 0x34b   :  { %v405_v13 = vadd.f32 %v401_v12, %v1234_v4  ;;  %v810_v12 = vld [vmem:[%s1384_s15] sm:$0xf] }
 0x34d   :  { %v407_v14 = vsel %vm181_vm0, %v405_v13, 0.0 }
 0x34e   :  { %408 = vadd.xlane.f32.xlu0 %v407_v14  ;;  %v839_v14 = vld [vmem:[%s1384_s15 + $0x4] sm:$0xf] }
 0x350   :  { %v402_v15 = vpop.f32.mrf.mxu2 }
 0x351   :  { %v403_v16 = vadd.f32 %v867_v10, %v402_v15  ;;  %v820_v10 = vld [vmem:[%s1384_s15 + $0x18] sm:$0xf0] }
 0x352   :  { %v823_v11 = vor.u32 %v841_v9, %v820_v10 }
 0x353   :  { %v406_v17 = vadd.f32 %v403_v16, %v1236_v5  ;;  %v812_v16 = vld [vmem:[%s1384_s15 + $0x8] sm:$0xf0] }
 0x354   :  { %564 = vmatpush.bf16.msra.mxu1 %v823_v11 }
 0x355   :  { %v410_v18 = vsel %vm181_vm0, %v406_v17, 0.0 }
 0x356   :  { %411 = vadd.xlane.f32.xlu1 %v410_v18 }
 0x3c1   :  { %v409_v4 = vpop.xlane.xlu0 %408 }
 0x3c2   :  { %v420_v26 = vmul.f32 %v419_v25, %v409_v4  ;;  %v515_v4 = vld [vmem:[%s1385_s16] sm:$0x3] }
 0x3c4   :  { %v422_v27 = vsub.f32 %v405_v13, %v420_v26  ;;  %v840_v13 = vld [vmem:[%s1384_s15 + $0x4] sm:$0xf0]  ;;  %v517_v26 = vperm.slane %v515_v4, 0 }
 0x3c5   :  { %v811_v15 = vor.u32 %v840_v13, %v810_v12 }
 0x3c6   :  { %v424_v28 = vmul.f32 %v422_v27, %v422_v27 }
 0x3c7   :  { %551 = vmatpush.bf16.msra.mxu0 %v811_v15 }
 0x3c8   :  { %v426_v29 = vsel %vm181_vm0, %v424_v28, 0.0 }
 0x3c9   :  { %v412_v30 = vpop.xlane.xlu1 %411  ;;  %427 = vadd.xlane.f32.xlu2 %v426_v29 }
 0x3ca   :  { %v421_v5 = vmul.f32 %v419_v25, %v412_v30 }
 0x3cc   :  { %v423_v31 = vsub.f32 %v406_v17, %v421_v5  ;;  %v815_v17 = vor.u32 %v839_v14, %v812_v16  ;;  %v698_v16 = vld [vmem:[%s1373_s4] sm:$0xff] }
 0x3cd   :  { %vm714_vm2 = vcmp.eq.s32.totalorder %v698_v16, 0 }
 0x3ce   :  { %v425_v33 = vmul.f32 %v423_v31, %v423_v31  ;;  %565 = vmatpush.bf16.msra.mxu1 %v815_v17 }
 0x3d0   :  { %v429_v34 = vsel %vm181_vm0, %v425_v33, 0.0 }
 0x3d1   :  { %430 = vadd.xlane.f32.xlu0 %v429_v34 }
 0x43c   :  { %v428_v36 = vpop.xlane.xlu2 %427 }
 0x43d   :  { %v432_v38 = vmul.f32 %v428_v36, %v419_v25 }
 0x43f   :  { %v434_v39 = vadd.f32 1e-05, %v432_v38 }
 0x441   :  { %881 = vrsqrt.f32 %v434_v39  ;;  %vm442_vm9 = vweird.f32 %v434_v39 }
 0x444   :  { %v431_v40 = vpop.xlane.xlu0 %430 }
 0x445   :  { %v433_v41 = vmul.f32 %v431_v40, %v419_v25  ;;  %v1100_v40 = vmov 1  }
 0x446   :  { %861 = vset.pattern.permute.xlu2 %v1100_v40 }
 0x447   :  { %v882_v42 = vpop.eup %881  ;;  %v435_v43 = vadd.f32 1e-05, %v433_v41  ;;  %v631_v41 = vld [vmem:[%s1372_s3 + $0x8] sm:$0xff] }
 0x448   :  { %v437_v44 = vmul.f32 %v882_v42, %v434_v39  ;;  %vm443_vm8 = vweird.f32 %v882_v42  ;;  %v630_v39 = vld [vmem:[%s1372_s3] sm:$0xff] }
 0x449   :  { %883 = vrsqrt.f32 %v435_v43  ;;  %vm444_vm10 = vmor %vm442_vm9, %vm443_vm8  ;;  %vm452_vm12 = vweird.f32 %v435_v43 }
 0x44a   :  { %v438_v45 = vmul.f32 %v882_v42, %v437_v44 }
 0x44c   :  { %v439_v46 = vmul.f32 0.5, %v438_v45 }
 0x44e   :  { %v440_v47 = vsub.f32 1.5, %v439_v46 }
 0x44f   :  { %v884_v48 = vpop.eup %883 }
 0x450   :  { %v441_v49 = vmul.f32 %v882_v42, %v440_v47  ;;  %v447_v50 = vmul.f32 %v884_v48, %v435_v43  ;;  %vm453_vm11 = vweird.f32 %v884_v48 }
 0x451   :  { %vm454_vm13 = vmor %vm452_vm12, %vm453_vm11 }
 0x452   :  { %v448_v51 = vmul.f32 %v884_v48, %v447_v50  ;;  %v445_v52 = vsel %vm444_vm10, %v882_v42, %v441_v49  ;;  %v518_v50 = vperm.slane %v515_v4, 1 }
 0x453   :  { %v456_v55 = vmul.f32 %v445_v52, %v422_v27  ;;  %v632_v52 = vlaneseq }
 0x454   :  { %v449_v53 = vmul.f32 0.5, %v448_v51 }
 0x455   :  { %v462_v61 = vmul.f32 %v868_v56, %v456_v55 }
 0x456   :  { %v450_v54 = vsub.f32 1.5, %v449_v53  ;;  %v1335_v53 = vand.u32 127, %v632_v52 }
 0x457   :  { %v468_v1 = vadd.f32 %v869_v62, %v462_v61 }
 0x458   :  { %v451_v57 = vmul.f32 %v884_v48, %v450_v54 }
 0x45a   :  { %v455_v58 = vsel %vm454_vm13, %v884_v48, %v451_v57 }
 0x45b   :  { %v457_v59 = vmul.f32 %v455_v58, %v423_v31 }
 0x45d   :  { %v463_v63 = vmul.f32 %v868_v56, %v457_v59  ;;  %v1101_v56 = vmov 0.0  }
 0x45f   :  { %v469_v2 = vadd.f32 %v869_v62, %v463_v63 }
 0x461   :  { %v470_v3 = vpack.c.bf16 %v469_v2, %v468_v1 }
 0x463   :  { %807 = vmatmul.msk.bf16.vlgmr.msrb.gmra.mxu3 %vm181_vm0, %v470_v3 }
 0x4e6   :  { %v503_v18 = vpop.f32.mrf.mxu3 }
 0x4e7   :  { %v504_v20 = vadd.f32 %v870_v19, %v503_v18 }
 0x4e9   :  { %885 = vtanh.f32 %v504_v20 }
 0x4ee   :  { %v505_v21 = vpop.f32.mrf.mxu3 }
 0x4ef   :  { %v506_v22 = vadd.f32 %v870_v19, %v505_v21  ;;  %v886_v23 = vpop.eup %885 }
 0x4f1   :  { %887 = vtanh.f32 %v506_v22 }
 0x4f7   :  { %v888_v24 = vpop.eup %887 }
 0x4f8   :  { %v510_v25 = vpack.c.bf16 %v888_v24, %v886_v23 }
 0x4fa   :  { %824 = vmatmul.msk.bf16.vlgmr.msra.gmra.mxu0 %vm181_vm0, %v510_v25  ;;  %825 = vmatmul.msk.bf16.vlgmr.msra.gmra.mxu1 %vm181_vm0, %v510_v25 }
 0x577   :  { %v553_v27 = vpop.f32.mrf.mxu0  ;;  %v567_v48 = vpop.f32.mrf.mxu1 }
 0x578   :  { %v554_v28 = vadd.f32 %v553_v27, %v517_v26  ;;  %v568_v55 = vadd.f32 %v567_v48, %v518_v50 }
 0x57a   :  { %572 = vmax.xlane.f32.xlu1 %v554_v28 }
 0x57f   :  { %v555_v29 = vpop.f32.mrf.mxu0  ;;  %v569_v49 = vpop.f32.mrf.mxu1 }
 0x580   :  { %v556_v30 = vadd.f32 %v555_v29, %v517_v26  ;;  %v570_v51 = vadd.f32 %v569_v49, %v518_v50 }
 0x582   :  { %574 = vmax.xlane.f32.xlu0 %v556_v30 }
 0x5ed   :  { %v573_v5 = vpop.xlane.xlu1 %572 }
 0x5ee   :  { %v576_v31 = vsub.f32 %v554_v28, %v573_v5 }
 0x5f0   :  { %v578_v33 = vmul.f32 1.442695, %v576_v31 }
 0x5f2   :  { %889 = vpow2.f32 %v578_v33 }
 0x5f5   :  { %v575_v34 = vpop.xlane.xlu0 %574 }
 0x5f6   :  { %v577_v35 = vsub.f32 %v556_v30, %v575_v34 }
 0x5f8   :  { %v890_v36 = vpop.eup %889  ;;  %v580_v37 = vmul.f32 1.442695, %v577_v35 }
 0x5f9   :  { %582 = vadd.xlane.f32.xlu1 %v890_v36 }
 0x5fa   :  { %891 = vpow2.f32 %v580_v37 }
 0x600   :  { %v892_v38 = vpop.eup %891 }
 0x601   :  { %584 = vadd.xlane.f32.xlu0 %v892_v38 }
 0x612   :  { %635 = vperm.xlu1 %859, %v630_v39  }
 0x615   :  { %638 = vperm.xlu0 %860, %v631_v41  }
 0x61a   :  { %862 = vset.pattern.permute.xlu1 %v1100_v40 }
 0x66c   :  { %v583_v42 = vpop.xlane.xlu1 %582 }
 0x66d   :  { %893 = vrcp.f32 %v583_v42 }
 0x673   :  { %v894_v43 = vpop.eup %893 }
 0x674   :  { %v585_v44 = vpop.xlane.xlu0 %584  ;;  %v588_v45 = vmul.f32 %v894_v43, %v890_v36 }
 0x675   :  { %895 = vrcp.f32 %v585_v44 }
 0x676   :  { %621 = vperm.xlu2 %861, %v588_v45  }
 0x67b   :  { %v896_v46 = vpop.eup %895 }
 0x67c   :  { %v589_v47 = vmul.f32 %v896_v46, %v892_v38 }
 0x67e   :  { %625 = vperm.xlu1 %862, %v589_v47   ;;  %863 = vset.pattern.permute.xlu2 %v1098_v32 }
 0x684   :  { %v636_v54 = vpop.permute.xlu1 %635 }
 0x685   :  { %vm640_vm14 = vcmp.eq.s32.totalorder %v636_v54, %v1335_v53 }
 0x686   :  { %864 = vset.pattern.permute.xlu1 %v1098_v32  ;;  %v826_v57 = vsel %vm640_vm14, 1.0, %v1101_v56 }
 0x687   :  { %v646_v58 = vpack.c.bf16 %v826_v57, %v826_v57  ;;  %v639_v32 = vpop.permute.xlu0 %638 }
 0x688   :  { %vm641_vm15 = vcmp.eq.s32.totalorder %v639_v32, %v1335_v53 }
 0x689   :  { %v654_v59 = vsel %vm326_vm1, %v646_v58, 0  ;;  %v827_v61 = vsel %vm641_vm15, 1.0, %v1101_v56 }
 0x68a   :  { %663 = vmatpush.bf16.msra.mxu2 %v654_v59  ;;  %v647_v62 = vpack.c.bf16 %v827_v61, %v827_v61 }
 0x68c   :  { %v673_v2 = vsel %vm326_vm1, %v647_v62, 0 }
 0x68d   :  { %682 = vmatpush.bf16.msra.mxu3 %v673_v2 }
 0x69f   :  { %592 = vmax.xlane.f32.xlu2 %v570_v51 }
 0x6a8   :  { %590 = vmax.xlane.f32.xlu1 %v568_v55 }
 0x6b7   :  { %602 = vperm.xlu2 %863, %v588_v45  }
 0x6d0   :  { %v622_v63 = vpop.permute.xlu2 %621 }
 0x6d1   :  { %v628_v1 = vmul.f32 %v622_v63, %v1268_v60  ;;  %v1348_v60 = vld [vmem:[%s1373_s4 + $0x8] sm:$0xff]  ;;  %s1102_s4 = smov [#allocation13]  }
 0x6d2   :  { %704 = vperm.xlu2 %863, %v1348_v60   ;;  %s742_s11 = sshll.u32 %s1102_s4, 4  ;;  %vm715_vm4 = vcmp.eq.s32.totalorder %v1348_v60, 0  ;;  %s743_s11 = int_to_ptr.vmem [resolvable:$true] %s742_s11 }
 0x6d3   :  { %v648_v3 = vpack.c.bf16 %v628_v1, %v628_v1 }
 0x6d5   :  { %828 = vmatmul.msk.bf16.vlgmr.msra.gmra.mxu2 %vm293_vm5, %v648_v3 }
 0x6f0   :  { %v626_v6 = vpop.permute.xlu1 %625 }
 0x6f1   :  { %v629_v7 = vmul.f32 %v626_v6, %v1273_v0 }
 0x6f3   :  { %v649_v8 = vpack.c.bf16 %v629_v7, %v629_v7 }
 0x6f5   :  { %829 = vmatmul.msk.bf16.vlgmr.msra.gmra.mxu3 %vm293_vm5, %v649_v8  ;;  %vm735_vm5 = vcmask 0  }
 0x712   :  { %v593_v9 = vpop.xlane.xlu2 %592 }
 0x713   :  { %v595_v10 = vsub.f32 %v570_v51, %v593_v9 }
 0x715   :  { %v598_v11 = vmul.f32 1.442695, %v595_v10 }
 0x717   :  { %897 = vpow2.f32 %v598_v11 }
 0x71a   :  { %v603_v22 = vpop.permute.xlu2 %602 }
 0x71b   :  { %v591_v12 = vpop.xlane.xlu1 %590 }
 0x71c   :  { %v594_v13 = vsub.f32 %v568_v55, %v591_v12 }
 0x71d   :  { %v898_v14 = vpop.eup %897 }
 0x71e   :  { %v596_v15 = vmul.f32 1.442695, %v594_v13  ;;  %614 = vadd.xlane.f32.xlu1 %v898_v14 }
 0x720   :  { %899 = vpow2.f32 %v596_v15 }
 0x726   :  { %v900_v0 = vpop.eup %899 }
 0x727   :  { %612 = vadd.xlane.f32.xlu0 %v900_v0  ;;  %v610_v23 = vmul.f32 %v900_v0, %v603_v22 }
 0x72c   :  { %v705_v38 = vpop.permute.xlu2 %704 }
 0x72d   :  { %vm707_vm1 = vcmp.eq.s32.totalorder %v705_v38, %v1335_v53 }
 0x737   :  { %607 = vperm.xlu1 %864, %v589_v47  }
 0x73b   :  { %701 = vperm.xlu0 %860, %v698_v16  }
 0x758   :  { %v665_v17 = vpop.f32.mrf.mxu2 }
 0x760   :  { %v667_v18 = vpop.f32.mrf.mxu2 }
 0x778   :  { %v684_v19 = vpop.f32.mrf.mxu3 }
 0x780   :  { %v686_v20 = vpop.f32.mrf.mxu3 }
 0x791   :  { %v615_v25 = vpop.xlane.xlu1 %614 }
 0x79a   :  { %v613_v21 = vpop.xlane.xlu0 %612 }
 0x79b   :  { %901 = vrcp.f32 %v613_v21 }
 0x79c   :  { %903 = vrcp.f32 %v615_v25 }
 0x7a1   :  { %v902_v24 = vpop.eup %901 }
 0x7a2   :  { %v618_v4 = vmul.f32 %v902_v24, %v610_v23  ;;  %v904_v30 = vpop.eup %903 }
 0x7a4   :  { %v688_v26 = vadd.f32 %v665_v17, %v618_v4 }
 0x7a6   :  { %v690_v27 = vadd.f32 1e-12, %v688_v26 }
 0x7a8   :  { %905 = vlog2.f32 %v690_v27 }
 0x7a9   :  { %v608_v28 = vpop.permute.xlu1 %607 }
 0x7aa   :  { %v611_v29 = vmul.f32 %v898_v14, %v608_v28 }
 0x7ac   :  { %v619_v5 = vmul.f32 %v904_v30, %v611_v29 }
 0x7ad   :  { %v702_v31 = vpop.permute.xlu0 %701 }
 0x7ae   :  { %v906_v33 = vpop.eup %905  ;;  %v689_v34 = vadd.f32 %v684_v19, %v619_v5  ;;  %vm706_vm0 = vcmp.eq.s32.totalorder %v702_v31, %v1335_v53 }
 0x7af   :  { %v693_v35 = vmul.f32 0.6931472, %v906_v33 }
 0x7b0   :  { %v691_v36 = vadd.f32 1e-12, %v689_v34 }
 0x7b1   :  { %v708_v37 = vsel %vm706_vm0, %v693_v35, 0.0  ;;  %696 = vst [vmem:[#allocation13] sm:$0xff] %v693_v35 }
 0x7b2   :  { %710 = vadd.xlane.f32.xlu1 %v708_v37  ;;  %907 = vlog2.f32 %v691_v36 }
 0x7b8   :  { %v908_v39 = vpop.eup %907 }
 0x7b9   :  { %v695_v40 = vmul.f32 0.6931472, %v908_v39 }
 0x7bb   :  { %v709_v41 = vsel %vm707_vm1, %v695_v40, 0.0  ;;  %697 = vst [vmem:[#allocation13 + $0x8] sm:$0xff] %v695_v40 }
 0x7bc   :  { %712 = vadd.xlane.f32.xlu0 %v709_v41  ;;  %750 = dma.vmem_to_hbm [thread:$0]  %s743_s11, 256, %s745_s13, [#allocation4], %s1092_s19, %s1092_s19, %s1093_s20  }
 0x825   :  { %v711_v42 = vpop.xlane.xlu1 %710 }
 0x826   :  { %v716_v43 = vsub.f32 0.0, %v711_v42 }
 0x828   :  { %v718_v44 = vsel %vm714_vm2, 0.0, %v716_v43 }
 0x829   :  { %v721_v45 = vsel %vm720_vm3, %v718_v44, 0.0 }
 0x82a   :  { %v722_v46 = vrot.slane %v721_v45, 4 }
 0x82c   :  { %v723_v47 = vadd.f32 %v722_v46, %v721_v45 }
 0x82e   :  { %v724_v48 = vrot.slane %v723_v47, 2 }
 0x82f   :  { %v713_v49 = vpop.xlane.xlu0 %712 }
 0x830   :  { %v725_v50 = vadd.f32 %v724_v48, %v723_v47  ;;  %v717_v51 = vsub.f32 0.0, %v713_v49 }
 0x832   :  { %v726_v52 = vrot.slane %v725_v50, 1  ;;  %v719_v53 = vsel %vm715_vm4, 0.0, %v717_v51 }
 0x833   :  { %v728_v54 = vsel %vm720_vm3, %v719_v53, 0.0 }
 0x834   :  { %v727_v55 = vadd.f32 %v726_v52, %v725_v50  ;;  %v729_v56 = vrot.slane %v728_v54, 4 }
 0x836   :  { %736 = vst.msk [vmem:[%s1387_s18] sm:$0x1] %vm735_vm5, %v727_v55  ;;  %v730_v57 = vadd.f32 %v729_v56, %v728_v54 }
 0x838   :  { %v731_v58 = vrot.slane %v730_v57, 2 }
 0x83a   :  { %v732_v59 = vadd.f32 %v731_v58, %v730_v57 }
 0x83c   :  { %v733_v32 = vrot.slane %v732_v59, 1 }
 0x83e   :  { %v734_v61 = vadd.f32 %v733_v32, %v732_v59 }
 0x840   :  { %737 = vst.msk [vmem:[%s1387_s18 + $0x1] sm:$0x1] %vm735_vm5, %v734_v61 }
 0x841   :  { %1085 = dma.done.wait [#allocation4], 256  }
 0x842   :  { %1086 = vsyncadd [#allocation4], 4294967040 }
 0x843   :  { %759 = vsyncpa [#allocation3], 1 }
 0x844   :  { %760 = vsyncpa [#allocation6], 1 }
 0x845   :  { %761 = vsyncpa [#allocation9], 1 }
 0x846   :  { %762 = vsyncpa [#allocation12], 1 }
 0x847   :  { %763 = vsyncpa [#allocation4], 1 }

// kernel: tpu_custom_call.1
= control target key start
LH: loop header
LB: loop body
LE: loop exit
PB: predicated region body
PF: predicated region fallthrough
CT: control target
= control target key end

     0   :  { %s1369_s0 = inlined_call_operand.hbm [shape: f32[2,8,32], index: 0, kind: input, shape index: {}]   ;;  %s1370_s1 = inlined_call_operand.hbm [shape: bf16[2,8,32], index: 1, kind: input, shape index: {}]   ;;  %s1371_s2 = inlined_call_operand.vmem [shape: f32[2,1,8], index: 2, kind: input, shape index: {}]   ;;  %s1372_s3 = inlined_call_operand.vmem [shape: s32[2,8,1], index: 3, kind: input, shape index: {}]   ;;  %s1373_s4 = inlined_call_operand.vmem [shape: s32[2,8,1], index: 4, kind: input, shape index: {}]   ;;  %s1374_s5 = inlined_call_operand.hbm [shape: bf16[32,32], index: 5, kind: input, shape index: {}]   ;;  %s1375_s6 = inlined_call_operand.vmem [shape: f32[1,32], index: 6, kind: input, shape index: {}]   ;;  %s1376_s7 = inlined_call_operand.hbm [shape: bf16[32,64], index: 7, kind: input, shape index: {}]   ;;  %s1377_s8 = inlined_call_operand.vmem [shape: f32[1,64], index: 8, kind: input, shape index: {}]   ;;  %s1378_s9 = inlined_call_operand.hbm [shape: bf16[32,32], index: 9, kind: input, shape index: {}]   ;;  %s1379_s10 = inlined_call_operand.vmem [shape: f32[1,32], index: 10, kind: input, shape index: {}]   ;;  %s1380_s11 = inlined_call_operand.vmem [shape: f32[1,32], index: 11, kind: input, shape index: {}]   ;;  %s1381_s12 = inlined_call_operand.vmem [shape: f32[1,32], index: 12, kind: input, shape index: {}]   ;;  %s1382_s13 = inlined_call_operand.hbm [shape: bf16[32,32], index: 13, kind: input, shape index: {}]   ;;  %s1383_s14 = inlined_call_operand.vmem [shape: f32[1,32], index: 14, kind: input, shape index: {}]   ;;  %s1384_s15 = inlined_call_operand.vmem [shape: bf16[32,256], index: 15, kind: input, shape index: {}]   ;;  %s1385_s16 = inlined_call_operand.vmem [shape: f32[1,256], index: 16, kind: input, shape index: {}]   ;;  %s1386_s17 = inlined_call_operand.hbm [shape: f32[2,8,128], index: 17, kind: output, shape index: {0}]   ;;  %s1387_s18 = inlined_call_operand.vmem [shape: f32[2,1,1], index: 18, kind: output, shape index: {1}]  }
   0x1   :  { %1389 = sst [smem:[#allocation19_spill]] %s1369_s0 }
   0x2   :  { %1390 = sst [smem:[#allocation20_spill]] %s1370_s1 }
   0x3   :  { %1391 = sst [smem:[#allocation21_spill]] %s1371_s2 }
   0x4   :  { %24 = vsyncpa [#allocation3], 0 }
   0x5   :  { %25 = vsyncpa [#allocation6], 0 }
   0x6   :  { %26 = vsyncpa [#allocation9], 0 }
   0x7   :  { %27 = vsyncpa [#allocation12], 0  ;;  %s1392_s29 = sld [smem:[#allocation20_spill]] }
   0xd   :  { %s46_s30 = sshll.u32 %s1392_s29, 4  ;;  %s47_s30 = int_to_ptr.hbm [resolvable:$true] %s46_s30 }
   0xe   :  { %28 = vsyncpa [#allocation4], 0  ;;  %s1087_s0 = smov [#allocation5]   ;;  %s80_s21 = sshll.u32 %s1376_s7, 4  ;;  %s81_s21 = int_to_ptr.hbm [resolvable:$true] %s80_s21 }
   0xf   :  { %s48_s19 = sshll.u32 %s1087_s0, 4  ;;  %s1088_s22 = smov 64   ;;  %s49_s19 = int_to_ptr.vmem [resolvable:$true] %s48_s19 }
  0x10   :  { %s1089_s2 = smov 4   ;;  %s1090_s23 = smov [#allocation8]  }
  0x11   :  { %54 = dma.hbm_to_vmem [thread:$0]  %s47_s30, 128, %s49_s19, [#allocation6], %s1088_s22, %s1088_s22, %s1089_s2  }
  0x12   :  { %s82_s24 = sshll.u32 %s1090_s23, 4  ;;  %s1393_s27 = sld [smem:[#allocation19_spill]]  ;;  %s83_s24 = int_to_ptr.vmem [resolvable:$true] %s82_s24 }
  0x13   :  { %88 = dma.hbm_to_vmem [thread:$0]  %s81_s21, 256, %s83_s24, [#allocation9], %s1088_s22, %s1088_s22, %s1089_s2  }
  0x14   :  { %s1091_s7 = smov [#allocation2]   ;;  %s65_s30 = sshll.u32 %s1374_s5, 4  ;;  %s66_s30 = int_to_ptr.hbm [resolvable:$true] %s65_s30 }
  0x15   :  { %s35_s29 = sshll.u32 %s1091_s7, 4  ;;  %s1092_s19 = smov 128   ;;  %s36_s29 = int_to_ptr.vmem [resolvable:$true] %s35_s29 }
  0x16   :  { %s1093_s20 = smov 8   ;;  %s1094_s23 = smov [#allocation7]  }
  0x17   :  { %s67_s25 = sshll.u32 %s1094_s23, 4  ;;  %s95_s21 = sshll.u32 %s1378_s9, 4  ;;  %s68_s25 = int_to_ptr.vmem [resolvable:$true] %s67_s25  ;;  %s96_s21 = int_to_ptr.hbm [resolvable:$true] %s95_s21 }
  0x18   :  { %s33_s28 = sshll.u32 %s1393_s27, 4  ;;  %s114_s7 = sshll.u32 %s1382_s13, 4  ;;  %s34_s28 = int_to_ptr.hbm [resolvable:$true] %s33_s28  ;;  %s115_s7 = int_to_ptr.hbm [resolvable:$true] %s114_s7 }
  0x19   :  { %41 = dma.hbm_to_vmem [thread:$0]  %s34_s28, 256, %s36_s29, [#allocation3], %s1092_s19, %s1092_s19, %s1093_s20  }
  0x1a   :  { %73 = dma.hbm_to_vmem [thread:$0]  %s66_s30, 256, %s68_s25, [#allocation6], %s1088_s22, %s1088_s22, %s1089_s2  }
  0x1b   :  { %s1095_s0 = smov [#allocation10]   ;;  %s1096_s28 = smov [#allocation11]  }
  0x1c   :  { %s97_s1 = sshll.u32 %s1095_s0, 4  ;;  %s116_s9 = sshll.u32 %s1096_s28, 4  ;;  %s98_s1 = int_to_ptr.vmem [resolvable:$true] %s97_s1  ;;  %s117_s9 = int_to_ptr.vmem [resolvable:$true] %s116_s9 }
  0x1d   :  { %103 = dma.hbm_to_vmem [thread:$0]  %s96_s21, 256, %s98_s1, [#allocation9], %s1088_s22, %s1088_s22, %s1089_s2  }
  0x1e   :  { %122 = dma.hbm_to_vmem [thread:$0]  %s115_s7, 256, %s117_s9, [#allocation12], %s1088_s22, %s1088_s22, %s1089_s2  }
  0x1f   :  { %1077 = dma.done.wait [#allocation3], 256  }
  0x20   :  { %1078 = vsyncadd [#allocation3], 4294967040 }
  0x21   :  { %1079 = dma.done.wait [#allocation6], 384  }
  0x22   :  { %1080 = vsyncadd [#allocation6], 4294966912 }
  0x23   :  { %1081 = dma.done.wait [#allocation9], 512  }
  0x24   :  { %1082 = vsyncadd [#allocation9], 4294966784 }
  0x25   :  { %1083 = dma.done.wait [#allocation12], 256  }
  0x26   :  { %1084 = vsyncadd [#allocation12], 4294967040  ;;  %v832_v0 = vld [vmem:[#allocation7 + $0x8] sm:$0xff]  ;;  %v834_v1 = vld [vmem:[#allocation8 + $0x8] sm:$0xff]  ;;  %vm181_vm0 = vcmask 261120   ;;  %s1097_s30 = smov 96  }
  0x27   :  { %v831_v2 = vld [vmem:[#allocation7] sm:$0xff]  ;;  %v833_v3 = vld [vmem:[#allocation8] sm:$0xff]  ;;  %191 = vmatpush.bf16.msra.mxu0 %v832_v0  ;;  %233 = vmatpush.bf16.msra.mxu1 %v834_v1  ;;  %v1234_v4 = vld [vmem:[#allocation2] sm:$0xff]  ;;  %vm326_vm1 = vcmask 1043456   ;;  %v1098_v32 = vmov 0   ;;  %s1394_s23 = sld [smem:[#allocation21_spill]] }
  0x28   :  { %v1236_v5 = vld [vmem:[#allocation2 + $0x8] sm:$0xff]  ;;  %v830_v7 = vld [vmem:[#allocation5] sm:$0xff]  ;;  %v866_v8 = vld [vmem:[%s1377_s8] ss:$0 sm:$0xff]  ;;  %859 = vset.pattern.permute.xlu1 %v1098_v32  ;;  %860 = vset.pattern.permute.xlu0 %v1098_v32  ;;  %vm293_vm5 = vcmask 64512   ;;  %s744_s13 = sshll.u32 %s1386_s17, 4  ;;  %s745_s13 = int_to_ptr.hbm [resolvable:$true] %s744_s13 }
  0x29   :  { %v160_v6 = vpack.c.bf16 %v1236_v5, %v1234_v4  ;;  %v865_v10 = vld [vmem:[%s1375_s6] ss:$0 sm:$0xff] }
  0x2a   :  { %v836_v57 = vld [vmem:[#allocation10 + $0x8] sm:$0xff] }
  0x2b   :  { %192 = vmatpush.bf16.msra.mxu0 %v831_v2  ;;  %234 = vmatpush.bf16.msra.mxu1 %v833_v3  ;;  %v835_v2 = vld [vmem:[#allocation10] sm:$0xff] }
  0x2d   :  { %v156_v33 = vld [vmem:[%s1394_s23] sm:$0x1]  ;;  %v157_v35 = vld [vmem:[%s1394_s23 + $0x1] sm:$0x1] }
  0x2e   :  { %772 = vmatmul.msk.bf16.vlgmr.msra.gmra.mxu0 %vm181_vm0, %v160_v6  ;;  %785 = vmatmul.msk.bf16.vlgmr.msra.gmra.mxu1 %vm181_vm0, %v830_v7  ;;  %vm283_vm2 = vcmp.gt.f32.partialorder %v156_v33, 0.5  ;;  %vm284_vm3 = vcmp.gt.f32.partialorder %v157_v35, 0.5  ;;  %v838_v35 = vld [vmem:[#allocation11 + $0x8] sm:$0xff] }
  0x2f   :  { %v285_v34 = vsel %vm283_vm2, 1, %v1098_v32  ;;  %v286_v37 = vsel %vm284_vm3, 1, %v1098_v32  ;;  %vm720_vm3 = vcmask 7168  }
  0x30   :  { %v287_v36 = vperm.slane %v285_v34, 0  ;;  %v288_v41 = vperm.slane %v286_v37, 0  ;;  %v837_v37 = vld [vmem:[#allocation11] sm:$0xff] }
  0x32   :  { %vm289_vm4 = vcmp.eq.s32.totalorder %v287_v36, 1  ;;  %vm290_vm6 = vcmp.eq.s32.totalorder %v288_v41, 1 }
  0xab   :  { %v236_v9 = vpop.f32.mrf.mxu1  ;;  %v194_v12 = vpop.f32.mrf.mxu0 }
  0xac   :  { %v237_v11 = vadd.f32 %v866_v8, %v236_v9  ;;  %v195_v14 = vadd.f32 %v865_v10, %v194_v12 }
  0xae   :  { %v243_v13 = vpack.c.bf16 %v237_v11, %v237_v11  ;;  %v241_v19 = vpack.c.bf16 %v195_v14, %v195_v14 }
  0xb0   :  { %v249_v15 = vsel %vm181_vm0, %v243_v13, 0  ;;  %v319_v16 = vunpack.c.l.b16 %v243_v13 }
  0xb1   :  { %258 = vmatpush.bf16.xpose.msra.mxu2 %v249_v15 }
  0xb2   :  { %v320_v17 = vpack.c.b16 %v319_v16, %v319_v16 }
  0xb3   :  { %v238_v18 = vpop.f32.mrf.mxu1  ;;  %v196_v22 = vpop.f32.mrf.mxu0 }
  0xb4   :  { %v239_v20 = vadd.f32 %v866_v8, %v238_v18  ;;  %321 = vrot.lane.b32.xlu2 %v320_v17, %s1097_s30  ;;  %v197_v25 = vadd.f32 %v865_v10, %v196_v22  ;;  %v867_v10 = vld [vmem:[%s1379_s10] ss:$0 sm:$0xff] }
  0xb6   :  { %v244_v21 = vpack.c.bf16 %v239_v20, %v239_v20  ;;  %v242_v27 = vpack.c.bf16 %v197_v25, %v197_v25 }
  0xb8   :  { %v344_v23 = vunpack.c.l.b16 %v244_v21  ;;  %786 = vmatmul.msk.bf16.vlgmr.msra.gmra.mxu2 %vm181_vm0, %v241_v19  ;;  %v268_v24 = vsel %vm181_vm0, %v244_v21, 0  ;;  %v1099_v19 = vmov 32.0  }
  0xb9   :  { %277 = vmatpush.bf16.xpose.msra.mxu3 %v268_v24  ;;  %397 = vmatpush.bf16.msrb.mxu2 %v836_v57 }
  0xba   :  { %v345_v26 = vpack.c.b16 %v344_v23, %v344_v23 }
  0xbc   :  { %346 = vrot.lane.b32.xlu2 %v345_v26, %s1097_s30 }
  0xbd   :  { %398 = vmatpush.bf16.msrb.mxu2 %v835_v2 }
  0xc0   :  { %787 = vmatmul.msk.bf16.vlgmr.msra.gmra.mxu3 %vm181_vm0, %v242_v27 }
  0xc1   :  { %500 = vmatpush.bf16.msrb.mxu3 %v838_v35 }
  0xc5   :  { %501 = vmatpush.bf16.msrb.mxu3 %v837_v37 }
 0x10e   :  { %v322_v28 = vpop.permute.xlu2 %321 }
 0x10f   :  { %v328_v29 = vsel %vm326_vm1, %v322_v28, 0 }
 0x110   :  { %337 = vmatpush.bf16.msrb.mxu0 %v328_v29 }
 0x116   :  { %v347_v30 = vpop.permute.xlu2 %346 }
 0x117   :  { %v352_v31 = vsel %vm326_vm1, %v347_v30, 0 }
 0x118   :  { %361 = vmatpush.bf16.msrb.mxu1 %v352_v31 }
 0x13b   :  { %v260_v38 = vpop.f32.mrf.mxu2 }
 0x13c   :  { %v291_v39 = vsel %vm289_vm4, -1e+30, %v260_v38 }
 0x13d   :  { %v294_v40 = vsel %vm293_vm5, %v291_v39, -inf }
 0x13e   :  { %295 = vmax.xlane.f32.xlu0 %v294_v40 }
 0x143   :  { %v262_v42 = vpop.f32.mrf.mxu2  ;;  %v279_v43 = vpop.f32.mrf.mxu3 }
 0x144   :  { %v292_v44 = vsel %vm290_vm6, -1e+30, %v279_v43 }
 0x145   :  { %v297_v45 = vsel %vm293_vm5, %v292_v44, -inf }
 0x146   :  { %298 = vmax.xlane.f32.xlu0 %v297_v45 }
 0x14b   :  { %v281_v46 = vpop.f32.mrf.mxu3 }
 0x1b1   :  { %v296_v47 = vpop.xlane.xlu0 %295 }
 0x1b2   :  { %v300_v48 = vsub.f32 %v291_v39, %v296_v47 }
 0x1b4   :  { %v302_v49 = vmul.f32 1.442695, %v300_v48 }
 0x1b6   :  { %871 = vpow2.f32 %v302_v49 }
 0x1b9   :  { %v299_v50 = vpop.xlane.xlu0 %298 }
 0x1ba   :  { %v301_v51 = vsub.f32 %v292_v44, %v299_v50 }
 0x1bc   :  { %v872_v52 = vpop.eup %871  ;;  %v304_v53 = vmul.f32 1.442695, %v301_v51 }
 0x1bd   :  { %v306_v54 = vsel %vm293_vm5, %v872_v52, 0.0 }
 0x1be   :  { %873 = vpow2.f32 %v304_v53  ;;  %307 = vadd.xlane.f32.xlu1 %v306_v54 }
 0x1c4   :  { %v874_v55 = vpop.eup %873 }
 0x1c5   :  { %v309_v56 = vsel %vm293_vm5, %v874_v55, 0.0 }
 0x1c6   :  { %310 = vadd.xlane.f32.xlu1 %v309_v56  ;;  %v868_v56 = vld [vmem:[%s1380_s11] ss:$0 sm:$0xff] }
 0x231   :  { %v308_v58 = vpop.xlane.xlu1 %307 }
 0x232   :  { %875 = vrcp.f32 %v308_v58 }
 0x238   :  { %v876_v59 = vpop.eup %875 }
 0x239   :  { %v1268_v60 = vmul.f32 %v876_v59, %v872_v52  ;;  %v311_v61 = vpop.xlane.xlu1 %310 }
 0x23a   :  { %877 = vrcp.f32 %v311_v61 }
 0x23b   :  { %v316_v62 = vpack.c.bf16 %v1268_v60, %v1268_v60  ;;  %879 = vrcp.f32 %v1099_v19  ;;  %v870_v19 = vld [vmem:[%s1383_s14] ss:$0 sm:$0xff] }
 0x23d   :  { %788 = vmatmul.msk.bf16.vlgmr.msrb.gmra.mxu0 %vm293_vm5, %v316_v62  ;;  %v869_v62 = vld [vmem:[%s1381_s12] ss:$0 sm:$0xff] }
 0x240   :  { %v878_v63 = vpop.eup %877 }
 0x241   :  { %v1273_v0 = vmul.f32 %v878_v63, %v874_v55  ;;  %v880_v20 = vpop.eup %879 }
 0x242   :  { %v414_v21 = vmul.f32 32.0, %v880_v20  ;;  %vm418_vm7 = vweird.f32 %v880_v20 }
 0x243   :  { %v317_v1 = vpack.c.bf16 %v1273_v0, %v1273_v0 }
 0x244   :  { %v415_v22 = vsub.f32 1.0, %v414_v21 }
 0x245   :  { %789 = vmatmul.msk.bf16.vlgmr.msrb.gmra.mxu1 %vm293_vm5, %v317_v1 }
 0x246   :  { %v416_v23 = vmul.f32 %v880_v20, %v415_v22 }
 0x248   :  { %v417_v24 = vadd.f32 %v880_v20, %v416_v23 }
 0x24a   :  { %v419_v25 = vsel %vm418_vm7, %v880_v20, %v417_v24 }
 0x2ba   :  { %v339_v3 = vpop.f32.mrf.mxu0 }
 0x2c2   :  { %v341_v6 = vpop.f32.mrf.mxu0  ;;  %v363_v7 = vpop.f32.mrf.mxu1 }
 0x2c3   :  { %v367_v8 = vpack.c.bf16 %v363_v7, %v339_v3  ;;  %v818_v6 = vld [vmem:[%s1384_s15 + $0x10] sm:$0xf]  ;;  %v842_v7 = vld [vmem:[%s1384_s15 + $0x14] sm:$0xf0] }
 0x2c5   :  { %798 = vmatmul.msk.bf16.vlgmr.msrb.gmra.mxu2 %vm181_vm0, %v367_v8  ;;  %v819_v8 = vor.u32 %v842_v7, %v818_v6 }
 0x2c7   :  { %550 = vmatpush.bf16.msra.mxu0 %v819_v8 }
 0x2ca   :  { %v365_v9 = vpop.f32.mrf.mxu1 }
 0x2cb   :  { %v841_v9 = vld [vmem:[%s1384_s15 + $0x14] sm:$0xf] }
 0x348   :  { %v400_v11 = vpop.f32.mrf.mxu2 }
 0x349   :  { %v401_v12 = vadd.f32 %v867_v10, %v400_v11 }
 0x34b   :  { %v405_v13 = vadd.f32 %v401_v12, %v1234_v4  ;;  %v810_v12 = vld [vmem:[%s1384_s15] sm:$0xf] }
 0x34d   :  { %v407_v14 = vsel %vm181_vm0, %v405_v13, 0.0 }
 0x34e   :  { %408 = vadd.xlane.f32.xlu0 %v407_v14  ;;  %v839_v14 = vld [vmem:[%s1384_s15 + $0x4] sm:$0xf] }
 0x350   :  { %v402_v15 = vpop.f32.mrf.mxu2 }
 0x351   :  { %v403_v16 = vadd.f32 %v867_v10, %v402_v15  ;;  %v820_v10 = vld [vmem:[%s1384_s15 + $0x18] sm:$0xf0] }
 0x352   :  { %v823_v11 = vor.u32 %v841_v9, %v820_v10 }
 0x353   :  { %v406_v17 = vadd.f32 %v403_v16, %v1236_v5  ;;  %v812_v16 = vld [vmem:[%s1384_s15 + $0x8] sm:$0xf0] }
 0x354   :  { %564 = vmatpush.bf16.msra.mxu1 %v823_v11 }
 0x355   :  { %v410_v18 = vsel %vm181_vm0, %v406_v17, 0.0 }
 0x356   :  { %411 = vadd.xlane.f32.xlu1 %v410_v18 }
 0x3c1   :  { %v409_v4 = vpop.xlane.xlu0 %408 }
 0x3c2   :  { %v420_v26 = vmul.f32 %v419_v25, %v409_v4  ;;  %v515_v4 = vld [vmem:[%s1385_s16] sm:$0x3] }
 0x3c4   :  { %v422_v27 = vsub.f32 %v405_v13, %v420_v26  ;;  %v840_v13 = vld [vmem:[%s1384_s15 + $0x4] sm:$0xf0]  ;;  %v517_v26 = vperm.slane %v515_v4, 0 }
 0x3c5   :  { %v811_v15 = vor.u32 %v840_v13, %v810_v12 }
 0x3c6   :  { %v424_v28 = vmul.f32 %v422_v27, %v422_v27 }
 0x3c7   :  { %551 = vmatpush.bf16.msra.mxu0 %v811_v15 }
 0x3c8   :  { %v426_v29 = vsel %vm181_vm0, %v424_v28, 0.0 }
 0x3c9   :  { %v412_v30 = vpop.xlane.xlu1 %411  ;;  %427 = vadd.xlane.f32.xlu2 %v426_v29 }
 0x3ca   :  { %v421_v5 = vmul.f32 %v419_v25, %v412_v30 }
 0x3cc   :  { %v423_v31 = vsub.f32 %v406_v17, %v421_v5  ;;  %v815_v17 = vor.u32 %v839_v14, %v812_v16  ;;  %v698_v16 = vld [vmem:[%s1373_s4] sm:$0xff] }
 0x3cd   :  { %vm714_vm2 = vcmp.eq.s32.totalorder %v698_v16, 0 }
 0x3ce   :  { %v425_v33 = vmul.f32 %v423_v31, %v423_v31  ;;  %565 = vmatpush.bf16.msra.mxu1 %v815_v17 }
 0x3d0   :  { %v429_v34 = vsel %vm181_vm0, %v425_v33, 0.0 }
 0x3d1   :  { %430 = vadd.xlane.f32.xlu0 %v429_v34 }
 0x43c   :  { %v428_v36 = vpop.xlane.xlu2 %427 }
 0x43d   :  { %v432_v38 = vmul.f32 %v428_v36, %v419_v25 }
 0x43f   :  { %v434_v39 = vadd.f32 1e-05, %v432_v38 }
 0x441   :  { %881 = vrsqrt.f32 %v434_v39  ;;  %vm442_vm9 = vweird.f32 %v434_v39 }
 0x444   :  { %v431_v40 = vpop.xlane.xlu0 %430 }
 0x445   :  { %v433_v41 = vmul.f32 %v431_v40, %v419_v25  ;;  %v1100_v40 = vmov 1  }
 0x446   :  { %861 = vset.pattern.permute.xlu2 %v1100_v40 }
 0x447   :  { %v882_v42 = vpop.eup %881  ;;  %v435_v43 = vadd.f32 1e-05, %v433_v41  ;;  %v631_v41 = vld [vmem:[%s1372_s3 + $0x8] sm:$0xff] }
 0x448   :  { %v437_v44 = vmul.f32 %v882_v42, %v434_v39  ;;  %vm443_vm8 = vweird.f32 %v882_v42  ;;  %v630_v39 = vld [vmem:[%s1372_s3] sm:$0xff] }
 0x449   :  { %883 = vrsqrt.f32 %v435_v43  ;;  %vm444_vm10 = vmor %vm442_vm9, %vm443_vm8  ;;  %vm452_vm12 = vweird.f32 %v435_v43 }
 0x44a   :  { %v438_v45 = vmul.f32 %v882_v42, %v437_v44 }
 0x44c   :  { %v439_v46 = vmul.f32 0.5, %v438_v45 }
 0x44e   :  { %v440_v47 = vsub.f32 1.5, %v439_v46 }
 0x44f   :  { %v884_v48 = vpop.eup %883 }
 0x450   :  { %v441_v49 = vmul.f32 %v882_v42, %v440_v47  ;;  %v447_v50 = vmul.f32 %v884_v48, %v435_v43  ;;  %vm453_vm11 = vweird.f32 %v884_v48 }
 0x451   :  { %vm454_vm13 = vmor %vm452_vm12, %vm453_vm11 }
 0x452   :  { %v448_v51 = vmul.f32 %v884_v48, %v447_v50  ;;  %v445_v52 = vsel %vm444_vm10, %v882_v42, %v441_v49  ;;  %v518_v50 = vperm.slane %v515_v4, 1 }
 0x453   :  { %v456_v55 = vmul.f32 %v445_v52, %v422_v27  ;;  %v632_v52 = vlaneseq }
 0x454   :  { %v449_v53 = vmul.f32 0.5, %v448_v51 }
 0x455   :  { %v462_v61 = vmul.f32 %v868_v56, %v456_v55 }
 0x456   :  { %v450_v54 = vsub.f32 1.5, %v449_v53  ;;  %v1335_v53 = vand.u32 127, %v632_v52 }
 0x457   :  { %v468_v1 = vadd.f32 %v869_v62, %v462_v61 }
 0x458   :  { %v451_v57 = vmul.f32 %v884_v48, %v450_v54 }
 0x45a   :  { %v455_v58 = vsel %vm454_vm13, %v884_v48, %v451_v57 }
 0x45b   :  { %v457_v59 = vmul.f32 %v455_v58, %v423_v31 }
 0x45d   :  { %v463_v63 = vmul.f32 %v868_v56, %v457_v59  ;;  %v1101_v56 = vmov 0.0  }
 0x45f   :  { %v469_v2 = vadd.f32 %v869_v62, %v463_v63 }
 0x461   :  { %v470_v3 = vpack.c.bf16 %v469_v2, %v468_v1 }
 0x463   :  { %807 = vmatmul.msk.bf16.vlgmr.msrb.gmra.mxu3 %vm181_vm0, %v470_v3 }
 0x4e6   :  { %v503_v18 = vpop.f32.mrf.mxu3 }
 0x4e7   :  { %v504_v20 = vadd.f32 %v870_v19, %v503_v18 }
 0x4e9   :  { %885 = vtanh.f32 %v504_v20 }
 0x4ee   :  { %v505_v21 = vpop.f32.mrf.mxu3 }
 0x4ef   :  { %v506_v22 = vadd.f32 %v870_v19, %v505_v21  ;;  %v886_v23 = vpop.eup %885 }
 0x4f1   :  { %887 = vtanh.f32 %v506_v22 }
 0x4f7   :  { %v888_v24 = vpop.eup %887 }
 0x4f8   :  { %v510_v25 = vpack.c.bf16 %v888_v24, %v886_v23 }
 0x4fa   :  { %824 = vmatmul.msk.bf16.vlgmr.msra.gmra.mxu0 %vm181_vm0, %v510_v25  ;;  %825 = vmatmul.msk.bf16.vlgmr.msra.gmra.mxu1 %vm181_vm0, %v510_v25 }
 0x577   :  { %v553_v27 = vpop.f32.mrf.mxu0  ;;  %v567_v48 = vpop.f32.mrf.mxu1 }
 0x578   :  { %v554_v28 = vadd.f32 %v553_v27, %v517_v26  ;;  %v568_v55 = vadd.f32 %v567_v48, %v518_v50 }
 0x57a   :  { %572 = vmax.xlane.f32.xlu1 %v554_v28 }
 0x57f   :  { %v555_v29 = vpop.f32.mrf.mxu0  ;;  %v569_v49 = vpop.f32.mrf.mxu1 }
 0x580   :  { %v556_v30 = vadd.f32 %v555_v29, %v517_v26  ;;  %v570_v51 = vadd.f32 %v569_v49, %v518_v50 }
 0x582   :  { %574 = vmax.xlane.f32.xlu0 %v556_v30 }
 0x5ed   :  { %v573_v5 = vpop.xlane.xlu1 %572 }
 0x5ee   :  { %v576_v31 = vsub.f32 %v554_v28, %v573_v5 }
 0x5f0   :  { %v578_v33 = vmul.f32 1.442695, %v576_v31 }
 0x5f2   :  { %889 = vpow2.f32 %v578_v33 }
 0x5f5   :  { %v575_v34 = vpop.xlane.xlu0 %574 }
 0x5f6   :  { %v577_v35 = vsub.f32 %v556_v30, %v575_v34 }
 0x5f8   :  { %v890_v36 = vpop.eup %889  ;;  %v580_v37 = vmul.f32 1.442695, %v577_v35 }
 0x5f9   :  { %582 = vadd.xlane.f32.xlu1 %v890_v36 }
 0x5fa   :  { %891 = vpow2.f32 %v580_v37 }
 0x600   :  { %v892_v38 = vpop.eup %891 }
 0x601   :  { %584 = vadd.xlane.f32.xlu0 %v892_v38 }
 0x612   :  { %635 = vperm.xlu1 %859, %v630_v39  }
 0x615   :  { %638 = vperm.xlu0 %860, %v631_v41  }
 0x61a   :  { %862 = vset.pattern.permute.xlu1 %v1100_v40 }
 0x66c   :  { %v583_v42 = vpop.xlane.xlu1 %582 }
 0x66d   :  { %893 = vrcp.f32 %v583_v42 }
 0x673   :  { %v894_v43 = vpop.eup %893 }
 0x674   :  { %v585_v44 = vpop.xlane.xlu0 %584  ;;  %v588_v45 = vmul.f32 %v894_v43, %v890_v36 }
 0x675   :  { %895 = vrcp.f32 %v585_v44 }
 0x676   :  { %621 = vperm.xlu2 %861, %v588_v45  }
 0x67b   :  { %v896_v46 = vpop.eup %895 }
 0x67c   :  { %v589_v47 = vmul.f32 %v896_v46, %v892_v38 }
 0x67e   :  { %625 = vperm.xlu1 %862, %v589_v47   ;;  %863 = vset.pattern.permute.xlu2 %v1098_v32 }
 0x684   :  { %v636_v54 = vpop.permute.xlu1 %635 }
 0x685   :  { %vm640_vm14 = vcmp.eq.s32.totalorder %v636_v54, %v1335_v53 }
 0x686   :  { %864 = vset.pattern.permute.xlu1 %v1098_v32  ;;  %v826_v57 = vsel %vm640_vm14, 1.0, %v1101_v56 }
 0x687   :  { %v646_v58 = vpack.c.bf16 %v826_v57, %v826_v57  ;;  %v639_v32 = vpop.permute.xlu0 %638 }
 0x688   :  { %vm641_vm15 = vcmp.eq.s32.totalorder %v639_v32, %v1335_v53 }
 0x689   :  { %v654_v59 = vsel %vm326_vm1, %v646_v58, 0  ;;  %v827_v61 = vsel %vm641_vm15, 1.0, %v1101_v56 }
 0x68a   :  { %663 = vmatpush.bf16.msra.mxu2 %v654_v59  ;;  %v647_v62 = vpack.c.bf16 %v827_v61, %v827_v61 }
 0x68c   :  { %v673_v2 = vsel %vm326_vm1, %v647_v62, 0 }
 0x68d   :  { %682 = vmatpush.bf16.msra.mxu3 %v673_v2 }
 0x69f   :  { %592 = vmax.xlane.f32.xlu2 %v570_v51 }
 0x6a8   :  { %590 = vmax.xlane.f32.xlu1 %v568_v55 }
 0x6b7   :  { %602 = vperm.xlu2 %863, %v588_v45  }
 0x6d0   :  { %v622_v63 = vpop.permute.xlu2 %621 }
 0x6d1   :  { %v628_v1 = vmul.f32 %v622_v63, %v1268_v60  ;;  %v1348_v60 = vld [vmem:[%s1373_s4 + $0x8] sm:$0xff]  ;;  %s1102_s4 = smov [#allocation13]  }
 0x6d2   :  { %704 = vperm.xlu2 %863, %v1348_v60   ;;  %s742_s11 = sshll.u32 %s1102_s4, 4  ;;  %vm715_vm4 = vcmp.eq.s32.totalorder %v1348_v60, 0  ;;  %s743_s11 = int_to_ptr.vmem [resolvable:$true] %s742_s11 }
 0x6d3   :  { %v648_v3 = vpack.c.bf16 %v628_v1, %v628_v1 }
 0x6d5   :  { %828 = vmatmul.msk.bf16.vlgmr.msra.gmra.mxu2 %vm293_vm5, %v648_v3 }
 0x6f0   :  { %v626_v6 = vpop.permute.xlu1 %625 }
 0x6f1   :  { %v629_v7 = vmul.f32 %v626_v6, %v1273_v0 }
 0x6f3   :  { %v649_v8 = vpack.c.bf16 %v629_v7, %v629_v7 }
 0x6f5   :  { %829 = vmatmul.msk.bf16.vlgmr.msra.gmra.mxu3 %vm293_vm5, %v649_v8  ;;  %vm735_vm5 = vcmask 0  }
 0x712   :  { %v593_v9 = vpop.xlane.xlu2 %592 }
 0x713   :  { %v595_v10 = vsub.f32 %v570_v51, %v593_v9 }
 0x715   :  { %v598_v11 = vmul.f32 1.442695, %v595_v10 }
 0x717   :  { %897 = vpow2.f32 %v598_v11 }
 0x71a   :  { %v603_v22 = vpop.permute.xlu2 %602 }
 0x71b   :  { %v591_v12 = vpop.xlane.xlu1 %590 }
 0x71c   :  { %v594_v13 = vsub.f32 %v568_v55, %v591_v12 }
 0x71d   :  { %v898_v14 = vpop.eup %897 }
 0x71e   :  { %v596_v15 = vmul.f32 1.442695, %v594_v13  ;;  %614 = vadd.xlane.f32.xlu1 %v898_v14 }
 0x720   :  { %899 = vpow2.f32 %v596_v15 }
 0x726   :  { %v900_v0 = vpop.eup %899 }
 0x727   :  { %612 = vadd.xlane.f32.xlu0 %v900_v0  ;;  %v610_v23 = vmul.f32 %v900_v0, %v603_v22 }
 0x72c   :  { %v705_v38 = vpop.permute.xlu2 %704 }
 0x72d   :  { %vm707_vm1 = vcmp.eq.s32.totalorder %v705_v38, %v1335_v53 }
 0x737   :  { %607 = vperm.xlu1 %864, %v589_v47  }
 0x73b   :  { %701 = vperm.xlu0 %860, %v698_v16  }
 0x758   :  { %v665_v17 = vpop.f32.mrf.mxu2 }
 0x760   :  { %v667_v18 = vpop.f32.mrf.mxu2 }
 0x778   :  { %v684_v19 = vpop.f32.mrf.mxu3 }
 0x780   :  { %v686_v20 = vpop.f32.mrf.mxu3 }
 0x791   :  { %v615_v25 = vpop.xlane.xlu1 %614 }
 0x79a   :  { %v613_v21 = vpop.xlane.xlu0 %612 }
 0x79b   :  { %901 = vrcp.f32 %v613_v21 }
 0x79c   :  { %903 = vrcp.f32 %v615_v25 }
 0x7a1   :  { %v902_v24 = vpop.eup %901 }
 0x7a2   :  { %v618_v4 = vmul.f32 %v902_v24, %v610_v23  ;;  %v904_v30 = vpop.eup %903 }
 0x7a4   :  { %v688_v26 = vadd.f32 %v665_v17, %v618_v4 }
 0x7a6   :  { %v690_v27 = vadd.f32 1e-12, %v688_v26 }
 0x7a8   :  { %905 = vlog2.f32 %v690_v27 }
 0x7a9   :  { %v608_v28 = vpop.permute.xlu1 %607 }
 0x7aa   :  { %v611_v29 = vmul.f32 %v898_v14, %v608_v28 }
 0x7ac   :  { %v619_v5 = vmul.f32 %v904_v30, %v611_v29 }
 0x7ad   :  { %v702_v31 = vpop.permute.xlu0 %701 }
 0x7ae   :  { %v906_v33 = vpop.eup %905  ;;  %v689_v34 = vadd.f32 %v684_v19, %v619_v5  ;;  %vm706_vm0 = vcmp.eq.s32.totalorder %v702_v31, %v1335_v53 }
 0x7af   :  { %v693_v35 = vmul.f32 0.6931472, %v906_v33 }
 0x7b0   :  { %v691_v36 = vadd.f32 1e-12, %v689_v34 }
 0x7b1   :  { %v708_v37 = vsel %vm706_vm0, %v693_v35, 0.0  ;;  %696 = vst [vmem:[#allocation13] sm:$0xff] %v693_v35 }
 0x7b2   :  { %710 = vadd.xlane.f32.xlu1 %v708_v37  ;;  %907 = vlog2.f32 %v691_v36 }
 0x7b8   :  { %v908_v39 = vpop.eup %907 }
 0x7b9   :  { %v695_v40 = vmul.f32 0.6931472, %v908_v39 }
 0x7bb   :  { %v709_v41 = vsel %vm707_vm1, %v695_v40, 0.0  ;;  %697 = vst [vmem:[#allocation13 + $0x8] sm:$0xff] %v695_v40 }
 0x7bc   :  { %712 = vadd.xlane.f32.xlu0 %v709_v41  ;;  %750 = dma.vmem_to_hbm [thread:$0]  %s743_s11, 256, %s745_s13, [#allocation4], %s1092_s19, %s1092_s19, %s1093_s20  }
 0x825   :  { %v711_v42 = vpop.xlane.xlu1 %710 }
 0x826   :  { %v716_v43 = vsub.f32 0.0, %v711_v42 }
 0x828   :  { %v718_v44 = vsel %vm714_vm2, 0.0, %v716_v43 }
 0x829   :  { %v721_v45 = vsel %vm720_vm3, %v718_v44, 0.0 }
 0x82a   :  { %v722_v46 = vrot.slane %v721_v45, 4 }
 0x82c   :  { %v723_v47 = vadd.f32 %v722_v46, %v721_v45 }
 0x82e   :  { %v724_v48 = vrot.slane %v723_v47, 2 }
 0x82f   :  { %v713_v49 = vpop.xlane.xlu0 %712 }
 0x830   :  { %v725_v50 = vadd.f32 %v724_v48, %v723_v47  ;;  %v717_v51 = vsub.f32 0.0, %v713_v49 }
 0x832   :  { %v726_v52 = vrot.slane %v725_v50, 1  ;;  %v719_v53 = vsel %vm715_vm4, 0.0, %v717_v51 }
 0x833   :  { %v728_v54 = vsel %vm720_vm3, %v719_v53, 0.0 }
 0x834   :  { %v727_v55 = vadd.f32 %v726_v52, %v725_v50  ;;  %v729_v56 = vrot.slane %v728_v54, 4 }
 0x836   :  { %736 = vst.msk [vmem:[%s1387_s18] sm:$0x1] %vm735_vm5, %v727_v55  ;;  %v730_v57 = vadd.f32 %v729_v56, %v728_v54 }
 0x838   :  { %v731_v58 = vrot.slane %v730_v57, 2 }
 0x83a   :  { %v732_v59 = vadd.f32 %v731_v58, %v730_v57 }
 0x83c   :  { %v733_v32 = vrot.slane %v732_v59, 1 }
 0x83e   :  { %v734_v61 = vadd.f32 %v733_v32, %v732_v59 }
 0x840   :  { %737 = vst.msk [vmem:[%s1387_s18 + $0x1] sm:$0x1] %vm735_vm5, %v734_v61 }
 0x841   :  { %1085 = dma.done.wait [#allocation4], 256  }
 0x842   :  { %1086 = vsyncadd [#allocation4], 4294967040 }
 0x843   :  { %759 = vsyncpa [#allocation3], 1 }
 0x844   :  { %760 = vsyncpa [#allocation6], 1 }
 0x845   :  { %761 = vsyncpa [#allocation9], 1 }
 0x846   :  { %762 = vsyncpa [#allocation12], 1 }
 0x847   :  { %763 = vsyncpa [#allocation4], 1 }

</bundles_post_ra>
